<compile_context>
chip_gen: v7x
topology: tpu7x:2x2x1
jax: 0.10.0
libtpu: 0.0.40
codegen_flags: <defaults>
</compile_context>

<pallas_src>
import jax
import jax.numpy as jnp
from jax.experimental import pallas as pl
from jax.experimental.pallas import tpu as pltpu


def _round_up(x, m):
    return ((x + m - 1) // m) * m


def _vmem_capacity_bytes():
    """Physical per-core VMEM; conservative fallback = v7x's 64 MiB."""
    try:
        cap = int(pltpu.get_tpu_info().vmem_capacity_bytes)
        if cap > 0:
            return cap
    except Exception:
        pass
    return 64 * 1024 * 1024


def _emb_vmem_bytes(bm, dk, Ep):
    """Double-buffered VMEM footprint of the embedding kernel for a K tile dk."""
    db = 2
    return (db * bm * dk * 2                          # x block, bf16
            + db * dk * Ep * 2                        # W_emb block, bf16
            + db * (Ep * 4 + Ep * Ep * 2 + Ep * 4)    # b_emb/W_ref/b_ref (headroom:
                                                      #  counted x2 even though we
                                                      #  request Buffered(1))
            + db * bm * Ep * (4 + 4 + 2 + 2)          # 4 output blocks (2 f32, 2 bf16)
            + bm * Ep * 4)                            # f32 accumulator scratch


def _head_vmem_bytes(bm, Ep, tn):
    """Double-buffered VMEM footprint of the head kernel for a tag tile tn."""
    db = 2
    return (db * 2 * bm * Ep * 2                      # init/ref embedding blocks, bf16
            + db * 2 * Ep * tn * 2                    # W_h1 / W_h2 blocks, bf16
            + db * 2 * tn * 4                         # b_h1 / b_h2 blocks, f32
            + db * 4 * bm * tn * 4)                   # 4 f32 output blocks


def _pick_tile(max_tile, full_dim, fits):
    """Largest multiple of 128 <= min(max_tile, full_dim) whose footprint fits."""
    cand = min(_round_up(max_tile, 128), full_dim)
    cand -= cand % 128
    cand = max(cand, 128)
    while cand > 128 and not fits(cand):
        cand -= 128
    return cand


def _invariant_spec(shape, index_map, single_buffer):
    """BlockSpec for a grid-invariant input; single-buffer it to save VMEM."""
    if single_buffer:
        return pl.BlockSpec(shape, index_map, pipeline_mode=pl.Buffered(1))
    return pl.BlockSpec(shape, index_map)


# --------------------------------------------------------------------------- #
# Kernel 1: backbone projection + refinement block (K-tiled over D).
# --------------------------------------------------------------------------- #
def _emb_kernel(
    x_ref,          # (bm, dk)  bf16
    w_emb_ref,      # (dk, Ep)  bf16   (streamed over K)
    b_emb_ref,      # (1,  Ep)  f32    (grid-invariant)
    w_ref_ref,      # (Ep, Ep)  bf16   (grid-invariant)
    b_ref_ref,      # (1,  Ep)  f32    (grid-invariant)
    init_emb_out,   # (bm, Ep)  f32
    ref_emb_out,    # (bm, Ep)  f32
    init_emb_bf_out,  # (bm, Ep) bf16  (handoff to head kernel)
    ref_emb_bf_out,   # (bm, Ep) bf16  (handoff to head kernel)
    acc_ref,        # VMEM (bm, Ep) f32 accumulator across K tiles
):
    k = pl.program_id(1)

    @pl.when(k == 0)
    def _():
        acc_ref[...] = jnp.zeros_like(acc_ref)

    acc_ref[...] += jnp.dot(
        x_ref[...], w_emb_ref[...], preferred_element_type=jnp.float32
    )

    @pl.when(k == pl.num_programs(1) - 1)
    def _():
        init_emb = acc_ref[...] + b_emb_ref[...]
        init_emb_bf = init_emb.astype(jnp.bfloat16)
        ref_pre = (
            jnp.dot(init_emb_bf, w_ref_ref[...], preferred_element_type=jnp.float32)
            + b_ref_ref[...]
        )
        # TODO(synk): tanh-approx GELU; PyTorch nn.GELU default is exact erf.
        ref_emb = jax.nn.gelu(ref_pre, approximate=True)
        init_emb_out[...] = init_emb
        ref_emb_out[...] = ref_emb
        init_emb_bf_out[...] = init_emb_bf
        ref_emb_bf_out[...] = ref_emb.astype(jnp.bfloat16)


# --------------------------------------------------------------------------- #
# Kernel 2: tag heads + FullWrapper sigmoids.  Grid is (tag tiles, batch tiles)
# with batch innermost so each head-weight block is fetched exactly once.
# --------------------------------------------------------------------------- #
def _head_kernel(
    ie_ref,         # (bm, Ep)  bf16
    re_ref,         # (bm, Ep)  bf16
    w_h1_ref,       # (Ep, tn)  bf16
    b_h1_ref,       # (1,  tn)  f32
    w_h2_ref,       # (Ep, tn)  bf16
    b_h2_ref,       # (1,  tn)  f32
    init_logits_out,  # (bm, tn) f32
    init_pred_out,    # (bm, tn) f32
    ref_logits_out,   # (bm, tn) f32
    ref_pred_out,     # (bm, tn) f32
):
    init_logits = (
        jnp.dot(ie_ref[...], w_h1_ref[...], preferred_element_type=jnp.float32)
        + b_h1_ref[...]
    )
    ref_logits = (
        jnp.dot(re_ref[...], w_h2_ref[...], preferred_element_type=jnp.float32)
        + b_h2_ref[...]
    )
    init_logits_out[...] = init_logits
    init_pred_out[...] = jax.nn.sigmoid(init_logits)   # FullWrapper sigmoid
    ref_logits_out[...] = ref_logits
    ref_pred_out[...] = jax.nn.sigmoid(ref_logits)     # FullWrapper sigmoid


def full_wrapper_forward(x_nchw, params, *, max_tag_tile=2048, max_k_tile=4096):
    """x_nchw: (B, C, H, W) float32.  Returns the 6-tuple from FullWrapper."""
    B, C, H, W = x_nchw.shape
    D = C * H * W
    x_flat = x_nchw.reshape(B, D)  # glue: NCHW -> (B, C*H*W), row-major

    w_emb, b_emb, w_h1, b_h1, w_ref, b_ref, w_h2, b_h2 = params
    E = w_emb.shape[1]
    T = w_h1.shape[1]

    # ---- padded, lane/sublane-dense dims ------------------------------------
    bm = min(_round_up(B, 8), 128)          # batch tile (sublane multiple)
    Bp = _round_up(B, bm)
    Ep = _round_up(E, 128)
    D128 = _round_up(D, 128)
    T128 = _round_up(T, 128)

    # ---- generation-aware VMEM budget / tile sizes --------------------------
    cap = _vmem_capacity_bytes()
    tile_budget = min(int(cap * 0.55), 72 * 1024 * 1024)
    vmem_limit = min(int(cap * 0.85), 100 * 1024 * 1024)

    dk = _pick_tile(max_k_tile, D128,
                    lambda c: _emb_vmem_bytes(bm, c, Ep) <= tile_budget)
    Dp = _round_up(D128, dk)
    tn = _pick_tile(max_tag_tile, T128,
                    lambda c: _head_vmem_bytes(bm, Ep, c) <= tile_budget)
    Tp = _round_up(T128, tn)

    def pad2(a, r, c):
        return jnp.pad(a, ((0, r - a.shape[0]), (0, c - a.shape[1])))

    # bf16 matmul operands (halves weight DMA bytes, native MXU dtype); biases
    # stay f32 and are added to the f32 accumulator.
    x_p     = pad2(x_flat, Bp, Dp).astype(jnp.bfloat16)
    w_emb_p = pad2(w_emb, Dp, Ep).astype(jnp.bfloat16)
    b_emb_p = pad2(b_emb, 1, Ep).astype(jnp.float32)
    w_ref_p = pad2(w_ref, Ep, Ep).astype(jnp.bfloat16)
    b_ref_p = pad2(b_ref, 1, Ep).astype(jnp.float32)
    w_h1_p  = pad2(w_h1, Ep, Tp).astype(jnp.bfloat16)
    b_h1_p  = pad2(b_h1, 1, Tp).astype(jnp.float32)
    w_h2_p  = pad2(w_h2, Ep, Tp).astype(jnp.bfloat16)
    b_h2_p  = pad2(b_h2, 1, Tp).astype(jnp.float32)

    # ------------------------- kernel 1: embeddings --------------------------
    emb_grid = (Bp // bm, Dp // dk)
    emb_out_shapes = (
        jax.ShapeDtypeStruct((Bp, Ep), jnp.float32),   # init_embeddings
        jax.ShapeDtypeStruct((Bp, Ep), jnp.float32),   # refined_embeddings
        jax.ShapeDtypeStruct((Bp, Ep), jnp.bfloat16),  # bf16 handoff (init)
        jax.ShapeDtypeStruct((Bp, Ep), jnp.bfloat16),  # bf16 handoff (refined)
    )
    emb_out_specs = tuple(
        pl.BlockSpec((bm, Ep), lambda b, k: (b, 0)) for _ in range(4)
    )
    emb_cost = pl.CostEstimate(
        flops=2 * Bp * Dp * Ep + 2 * Bp * Ep * Ep,
        transcendentals=Bp * Ep,
        bytes_accessed=int(
            Bp * Dp * 2                       # x
            + (Bp // bm) * Dp * Ep * 2        # W_emb re-streamed per batch tile
            + Ep * 4 + Ep * Ep * 2 + Ep * 4   # b_emb, W_ref, b_ref
            + Bp * Ep * (4 + 4 + 2 + 2)       # 4 outputs
        ),
    )

    def emb_call(single_buffer):
        in_specs = [
            pl.BlockSpec((bm, dk), lambda b, k: (b, k)),               # x
            pl.BlockSpec((dk, Ep), lambda b, k: (k, 0)),               # W_emb
            _invariant_spec((1, Ep),  lambda b, k: (0, 0), single_buffer),  # b_emb
            _invariant_spec((Ep, Ep), lambda b, k: (0, 0), single_buffer),  # W_ref
            _invariant_spec((1, Ep),  lambda b, k: (0, 0), single_buffer),  # b_ref
        ]
        return pl.pallas_call(
            _emb_kernel,
            out_shape=emb_out_shapes,
            grid_spec=pltpu.PrefetchScalarGridSpec(
                num_scalar_prefetch=0,
                grid=emb_grid,
                in_specs=in_specs,
                out_specs=emb_out_specs,
                scratch_shapes=[pltpu.VMEM((bm, Ep), jnp.float32)],
            ),
            compiler_params=pltpu.CompilerParams(
                dimension_semantics=("parallel", "arbitrary"),
                vmem_limit_bytes=vmem_limit,
            ),
            cost_estimate=emb_cost,
        )(x_p, w_emb_p, b_emb_p, w_ref_p, b_ref_p)

    single_buffer_ok = hasattr(pl, "Buffered")
    try:
        init_emb, ref_emb, ie_bf, re_bf = emb_call(single_buffer_ok)
    except Exception:
        if not single_buffer_ok:
            raise
        # Fallback: some jax versions may not honor pipeline_mode on pallas_call.
        init_emb, ref_emb, ie_bf, re_bf = emb_call(False)

    # --------------------------- kernel 2: heads ------------------------------
    head_grid = (Tp // tn, Bp // bm)       # batch innermost -> head weights reused
    head_out_shapes = tuple(
        jax.ShapeDtypeStruct((Bp, Tp), jnp.float32) for _ in range(4)
    )
    head_in_specs = [
        pl.BlockSpec((bm, Ep), lambda t, b: (b, 0)),   # init_emb (bf16)
        pl.BlockSpec((bm, Ep), lambda t, b: (b, 0)),   # ref_emb  (bf16)
        pl.BlockSpec((Ep, tn), lambda t, b: (0, t)),   # W_h1 (fetched once per t)
        pl.BlockSpec((1, tn),  lambda t, b: (0, t)),   # b_h1
        pl.BlockSpec((Ep, tn), lambda t, b: (0, t)),   # W_h2 (fetched once per t)
        pl.BlockSpec((1, tn),  lambda t, b: (0, t)),   # b_h2
    ]
    head_out_specs = tuple(
        pl.BlockSpec((bm, tn), lambda t, b: (b, t)) for _ in range(4)
    )
    head_cost = pl.CostEstimate(
        flops=4 * Bp * Ep * Tp,
        transcendentals=2 * Bp * Tp,
        bytes_accessed=int(
            (Tp // tn) * 2 * Bp * Ep * 2      # embeddings refetched per tag tile
            + 2 * Ep * Tp * 2                 # head weights fetched once each
            + 2 * Tp * 4                      # biases
            + 4 * Bp * Tp * 4                 # 4 f32 outputs
        ),
    )
    init_logits, init_pred, ref_logits, ref_pred = pl.pallas_call(
        _head_kernel,
        out_shape=head_out_shapes,
        grid_spec=pltpu.PrefetchScalarGridSpec(
            num_scalar_prefetch=0,
            grid=head_grid,
            in_specs=head_in_specs,
            out_specs=head_out_specs,
        ),
        compiler_params=pltpu.CompilerParams(
            dimension_semantics=("parallel", "parallel"),
            vmem_limit_bytes=vmem_limit,
        ),
        cost_estimate=head_cost,
    )(ie_bf, re_bf, w_h1_p, b_h1_p, w_h2_p, b_h2_p)

    # Slice padding off (batch rows, lane-padding columns).
    return (
        init_emb[:B, :E],
        init_logits[:B, :T],
        init_pred[:B, :T],
        ref_emb[:B, :E],
        ref_logits[:B, :T],
        ref_pred[:B, :T],
    )


def make_params(key, D, E, T):
    """Deterministic synthetic weights (no checkpoint load)."""
    ks = jax.random.split(key, 4)
    w_emb = jax.random.normal(ks[0], (D, E), jnp.float32) * (1.0 / jnp.sqrt(D))
    b_emb = jnp.zeros((1, E), jnp.float32)
    w_h1 = jax.random.normal(ks[1], (E, T), jnp.float32) * (1.0 / jnp.sqrt(E))
    b_h1 = jnp.zeros((1, T), jnp.float32)
    w_ref = jax.random.normal(ks[2], (E, E), jnp.float32) * (1.0 / jnp.sqrt(E))
    b_ref = jnp.zeros((1, E), jnp.float32)
    w_h2 = jax.random.normal(ks[3], (E, T), jnp.float32) * (1.0 / jnp.sqrt(E))
    b_h2 = jnp.zeros((1, T), jnp.float32)
    return (w_emb, b_emb, w_h1, b_h1, w_ref, b_ref, w_h2, b_h2)


if __name__ == "__main__":
    key = jax.random.PRNGKey(0)
    k_x, k_p = jax.random.split(key)

    B, C, H, W = 2, 4, 16, 16       # small NCHW input
    E, T = 32, 200                  # embedding dim, number of tags
    D = C * H * W

    x = jax.random.normal(k_x, (B, C, H, W), jnp.float32)
    params = make_params(k_p, D, E, T)

    # Small tile caps so the demo exercises both streaming paths
    # (multi-K-tile embedding accumulation + multi-tag-tile head loop);
    # use the defaults (2048 / 4096) for real Camie-sized D / T.
    outs = full_wrapper_forward(x, params, max_tag_tile=128, max_k_tile=256)
    outs = jax.block_until_ready(outs)

    # Reference in plain JAX, replicating the kernel's bf16 operand rounding and
    # tanh-approx GELU.
    w_emb, b_emb, w_h1, b_h1, w_ref, b_ref, w_h2, b_h2 = params

    def r(a):  # bf16 rounding of matmul operands
        return a.astype(jnp.bfloat16).astype(jnp.float32)

    xf = x.reshape(B, D)
    ie = r(xf) @ r(w_emb) + b_emb
    il = r(ie) @ r(w_h1) + b_h1
    re_ = jax.nn.gelu(r(ie) @ r(w_ref) + b_ref, approximate=True)
    rl = r(re_) @ r(w_h2) + b_h2
    refs = (ie, il, jax.nn.sigmoid(il), re_, rl, jax.nn.sigmoid(rl))

    names = ("init_emb", "init_logits", "init_pred",
             "ref_emb", "ref_logits", "ref_pred")
    for name, got, want in zip(names, outs, refs):
        assert got.shape == want.shape, (name, got.shape, want.shape)
        assert jnp.allclose(got, want, atol=3e-2, rtol=3e-2), name

    print("KERNEL_OK")
</pallas_src>

<mosaic_0001>
module attributes {stable_mosaic.version = 11 : i64} {
  func.func @_emb_kernel(%arg0: i32, %arg1: i32, %arg2: memref<8x256xbf16, #tpu.memory_space<vmem>>, %arg3: memref<256x128xbf16, #tpu.memory_space<vmem>>, %arg4: memref<1x128xf32, #tpu.memory_space<vmem>>, %arg5: memref<128x128xbf16, #tpu.memory_space<vmem>>, %arg6: memref<1x128xf32, #tpu.memory_space<vmem>>, %arg7: memref<8x128xf32, #tpu.memory_space<vmem>>, %arg8: memref<8x128xf32, #tpu.memory_space<vmem>>, %arg9: memref<8x128xbf16, #tpu.memory_space<vmem>>, %arg10: memref<8x128xbf16, #tpu.memory_space<vmem>>, %arg11: memref<8x128xf32, #tpu.memory_space<vmem>>) attributes {dimension_semantics = [#tpu.dimension_semantics<parallel>, #tpu.dimension_semantics<arbitrary>], iteration_bounds = array<i64: 1, 4>, scalar_prefetch = 0 : i64, scratch_operands = 1 : i64, tpu.core_type = #tpu.core_type<tc>, window_params = [{transform_indices = @transform_0, window_bounds = array<i64: 8, 256>}, {transform_indices = @transform_1, window_bounds = array<i64: 256, 128>}, {pipeline_mode = #tpu.pipeline_mode<synchronous>, transform_indices = @transform_2, window_bounds = array<i64: 1, 128>}, {pipeline_mode = #tpu.pipeline_mode<synchronous>, transform_indices = @transform_3, window_bounds = array<i64: 128, 128>}, {pipeline_mode = #tpu.pipeline_mode<synchronous>, transform_indices = @transform_4, window_bounds = array<i64: 1, 128>}, {transform_indices = @transform_5, window_bounds = array<i64: 8, 128>}, {transform_indices = @transform_6, window_bounds = array<i64: 8, 128>}, {transform_indices = @transform_7, window_bounds = array<i64: 8, 128>}, {transform_indices = @transform_8, window_bounds = array<i64: 8, 128>}]} {
    %c0_i32 = arith.constant 0 : i32
    %0 = arith.cmpi eq, %arg1, %c0_i32 : i32
    %1 = arith.extui %0 : i1 to i32
    %c0_i32_0 = arith.constant 0 : i32
    %2 = arith.cmpi ne, %1, %c0_i32_0 : i32
    scf.if %2 {
      %cst_9 = arith.constant 0.000000e+00 : f32
      %12 = vector.broadcast %cst_9 : f32 to vector<8x128xf32>
      %c0_10 = arith.constant 0 : index
      %c0_11 = arith.constant 0 : index
      %13 = vector.load %arg11[%c0_10, %c0_11] : memref<8x128xf32, #tpu.memory_space<vmem>>, vector<8x128xf32>
      tpu.vector_store %arg11[%c0_10, %c0_11], %12 {strides = array<i32>} : memref<8x128xf32, #tpu.memory_space<vmem>>, vector<8x128xf32>,
    } else {
    }
    %c0 = arith.constant 0 : index
    %c0_1 = arith.constant 0 : index
    %3 = vector.load %arg11[%c0, %c0_1] : memref<8x128xf32, #tpu.memory_space<vmem>>, vector<8x128xf32>
    %c0_2 = arith.constant 0 : index
    %c0_3 = arith.constant 0 : index
    %4 = vector.load %arg2[%c0_2, %c0_3] : memref<8x256xbf16, #tpu.memory_space<vmem>>, vector<8x256xbf16>
    %c0_4 = arith.constant 0 : index
    %c0_5 = arith.constant 0 : index
    %5 = vector.load %arg3[%c0_4, %c0_5] : memref<256x128xbf16, #tpu.memory_space<vmem>>, vector<256x128xbf16>
    %cst = arith.constant dense<0.000000e+00> : vector<8x128xf32>
    %6 = tpu.matmul %4, %5, %cst {dimension_numbers = #tpu.dot_dimension_numbers<[1], [0], [0], [1], [0, 0, 1, 1], [], []>} : vector<8x256xbf16>, vector<256x128xbf16>, vector<8x128xf32> -> vector<8x128xf32>
    %7 = arith.addf %3, %6 : vector<8x128xf32>
    %c0_6 = arith.constant 0 : index
    %c0_7 = arith.constant 0 : index
    %8 = vector.load %arg11[%c0_6, %c0_7] : memref<8x128xf32, #tpu.memory_space<vmem>>, vector<8x128xf32>
    tpu.vector_store %arg11[%c0_6, %c0_7], %7 {strides = array<i32>} : memref<8x128xf32, #tpu.memory_space<vmem>>, vector<8x128xf32>,
    %c3_i32 = arith.constant 3 : i32
    %9 = arith.cmpi eq, %arg1, %c3_i32 : i32
    %10 = arith.extui %9 : i1 to i32
    %c0_i32_8 = arith.constant 0 : i32
    %11 = arith.cmpi ne, %10, %c0_i32_8 : i32
    scf.if %11 {
      %c0_9 = arith.constant 0 : index
      %c0_10 = arith.constant 0 : index
      %12 = vector.load %arg11[%c0_9, %c0_10] : memref<8x128xf32, #tpu.memory_space<vmem>>, vector<8x128xf32>
      %c0_11 = arith.constant 0 : index
      %c0_12 = arith.constant 0 : index
      %13 = vector.load %arg4[%c0_11, %c0_12] : memref<1x128xf32, #tpu.memory_space<vmem>>, vector<1x128xf32>
      %14 = vector.broadcast %13 : vector<1x128xf32> to vector<8x128xf32>
      %15 = arith.addf %12, %14 : vector<8x128xf32>
      %16 = arith.truncf %15 : vector<8x128xf32> to vector<8x128xbf16>
      %c0_13 = arith.constant 0 : index
      %c0_14 = arith.constant 0 : index
      %17 = vector.load %arg5[%c0_13, %c0_14] : memref<128x128xbf16, #tpu.memory_space<vmem>>, vector<128x128xbf16>
      %cst_15 = arith.constant dense<0.000000e+00> : vector<8x128xf32>
      %18 = tpu.matmul %16, %17, %cst_15 {dimension_numbers = #tpu.dot_dimension_numbers<[1], [0], [0], [1], [0, 0, 1, 1], [], []>} : vector<8x128xbf16>, vector<128x128xbf16>, vector<8x128xf32> -> vector<8x128xf32>
      %c0_16 = arith.constant 0 : index
      %c0_17 = arith.constant 0 : index
      %19 = vector.load %arg6[%c0_16, %c0_17] : memref<1x128xf32, #tpu.memory_space<vmem>>, vector<1x128xf32>
      %20 = vector.broadcast %19 : vector<1x128xf32> to vector<8x128xf32>
      %21 = arith.addf %18, %20 : vector<8x128xf32>
      %22 = arith.mulf %21, %21 : vector<8x128xf32>
      %23 = arith.mulf %21, %22 : vector<8x128xf32>
      %cst_18 = arith.constant 4.471500e-02 : f32
      %24 = vector.broadcast %cst_18 : f32 to vector<8x128xf32>
      %25 = arith.mulf %24, %23 : vector<8x128xf32>
      %26 = arith.addf %21, %25 : vector<8x128xf32>
      %cst_19 = arith.constant 0.797884583 : f32
      %27 = vector.broadcast %cst_19 : f32 to vector<8x128xf32>
      %28 = arith.mulf %27, %26 : vector<8x128xf32>
      %29 = math.tanh %28 : vector<8x128xf32>
      %cst_20 = arith.constant 1.000000e+00 : f32
      %30 = vector.broadcast %cst_20 : f32 to vector<8x128xf32>
      %31 = arith.addf %30, %29 : vector<8x128xf32>
      %cst_21 = arith.constant 5.000000e-01 : f32
      %32 = vector.broadcast %cst_21 : f32 to vector<8x128xf32>
      %33 = arith.mulf %32, %31 : vector<8x128xf32>
      %34 = arith.mulf %21, %33 : vector<8x128xf32>
      %c0_22 = arith.constant 0 : index
      %c0_23 = arith.constant 0 : index
      %35 = vector.load %arg7[%c0_22, %c0_23] : memref<8x128xf32, #tpu.memory_space<vmem>>, vector<8x128xf32>
      tpu.vector_store %arg7[%c0_22, %c0_23], %15 {strides = array<i32>} : memref<8x128xf32, #tpu.memory_space<vmem>>, vector<8x128xf32>,
      %c0_24 = arith.constant 0 : index
      %c0_25 = arith.constant 0 : index
      %36 = vector.load %arg8[%c0_24, %c0_25] : memref<8x128xf32, #tpu.memory_space<vmem>>, vector<8x128xf32>
      tpu.vector_store %arg8[%c0_24, %c0_25], %34 {strides = array<i32>} : memref<8x128xf32, #tpu.memory_space<vmem>>, vector<8x128xf32>,
      %c0_26 = arith.constant 0 : index
      %c0_27 = arith.constant 0 : index
      %37 = vector.load %arg9[%c0_26, %c0_27] : memref<8x128xbf16, #tpu.memory_space<vmem>>, vector<8x128xbf16>
      tpu.vector_store %arg9[%c0_26, %c0_27], %16 {strides = array<i32>} : memref<8x128xbf16, #tpu.memory_space<vmem>>, vector<8x128xbf16>,
      %38 = arith.truncf %34 : vector<8x128xf32> to vector<8x128xbf16>
      %c0_28 = arith.constant 0 : index
      %c0_29 = arith.constant 0 : index
      %39 = vector.load %arg10[%c0_28, %c0_29] : memref<8x128xbf16, #tpu.memory_space<vmem>>, vector<8x128xbf16>
      tpu.vector_store %arg10[%c0_28, %c0_29], %38 {strides = array<i32>} : memref<8x128xbf16, #tpu.memory_space<vmem>>, vector<8x128xbf16>,
    } else {
    }
    return
  }
  func.func @transform_0(%arg0: i32, %arg1: i32) -> (i32, i32) {
    %c0_i32 = arith.constant 0 : i32
    return %arg0, %arg1 : i32, i32
  }
  func.func @transform_1(%arg0: i32, %arg1: i32) -> (i32, i32) {
    %c0_i32 = arith.constant 0 : i32
    %c0_i32_0 = arith.constant 0 : i32
    return %arg1, %c0_i32 : i32, i32
  }
  func.func @transform_2(%arg0: i32, %arg1: i32) -> (i32, i32) {
    %c0_i32 = arith.constant 0 : i32
    %c0_i32_0 = arith.constant 0 : i32
    %c0_i32_1 = arith.constant 0 : i32
    return %c0_i32, %c0_i32_0 : i32, i32
  }
  func.func @transform_3(%arg0: i32, %arg1: i32) -> (i32, i32) {
    %c0_i32 = arith.constant 0 : i32
    %c0_i32_0 = arith.constant 0 : i32
    %c0_i32_1 = arith.constant 0 : i32
    return %c0_i32, %c0_i32_0 : i32, i32
  }
  func.func @transform_4(%arg0: i32, %arg1: i32) -> (i32, i32) {
    %c0_i32 = arith.constant 0 : i32
    %c0_i32_0 = arith.constant 0 : i32
    %c0_i32_1 = arith.constant 0 : i32
    return %c0_i32, %c0_i32_0 : i32, i32
  }
  func.func @transform_5(%arg0: i32, %arg1: i32) -> (i32, i32) {
    %c0_i32 = arith.constant 0 : i32
    %c0_i32_0 = arith.constant 0 : i32
    return %arg0, %c0_i32 : i32, i32
  }
  func.func @transform_6(%arg0: i32, %arg1: i32) -> (i32, i32) {
    %c0_i32 = arith.constant 0 : i32
    %c0_i32_0 = arith.constant 0 : i32
    return %arg0, %c0_i32 : i32, i32
  }
  func.func @transform_7(%arg0: i32, %arg1: i32) -> (i32, i32) {
    %c0_i32 = arith.constant 0 : i32
    %c0_i32_0 = arith.constant 0 : i32
    return %arg0, %c0_i32 : i32, i32
  }
  func.func @transform_8(%arg0: i32, %arg1: i32) -> (i32, i32) {
    %c0_i32 = arith.constant 0 : i32
    %c0_i32_0 = arith.constant 0 : i32
    return %arg0, %c0_i32 : i32, i32
  }
}

module attributes {stable_mosaic.version = 11 : i64} {
  func.func @_emb_kernel(%arg0: i32, %arg1: i32, %arg2: memref<8x256xbf16, #tpu.memory_space<vmem>>, %arg3: memref<256x128xbf16, #tpu.memory_space<vmem>>, %arg4: memref<1x128xf32, #tpu.memory_space<vmem>>, %arg5: memref<128x128xbf16, #tpu.memory_space<vmem>>, %arg6: memref<1x128xf32, #tpu.memory_space<vmem>>, %arg7: memref<8x128xf32, #tpu.memory_space<vmem>>, %arg8: memref<8x128xf32, #tpu.memory_space<vmem>>, %arg9: memref<8x128xbf16, #tpu.memory_space<vmem>>, %arg10: memref<8x128xbf16, #tpu.memory_space<vmem>>, %arg11: memref<8x128xf32, #tpu.memory_space<vmem>>) attributes {dimension_semantics = [#tpu.dimension_semantics<parallel>, #tpu.dimension_semantics<arbitrary>], iteration_bounds = array<i64: 1, 4>, scalar_prefetch = 0 : i64, scratch_operands = 1 : i64, tpu.core_type = #tpu.core_type<tc>, window_params = [{transform_indices = @transform_0, window_bounds = array<i64: 8, 256>}, {transform_indices = @transform_1, window_bounds = array<i64: 256, 128>}, {pipeline_mode = #tpu.pipeline_mode<synchronous>, transform_indices = @transform_2, window_bounds = array<i64: 1, 128>}, {pipeline_mode = #tpu.pipeline_mode<synchronous>, transform_indices = @transform_3, window_bounds = array<i64: 128, 128>}, {pipeline_mode = #tpu.pipeline_mode<synchronous>, transform_indices = @transform_4, window_bounds = array<i64: 1, 128>}, {transform_indices = @transform_5, window_bounds = array<i64: 8, 128>}, {transform_indices = @transform_6, window_bounds = array<i64: 8, 128>}, {transform_indices = @transform_7, window_bounds = array<i64: 8, 128>}, {transform_indices = @transform_8, window_bounds = array<i64: 8, 128>}]} {
    %c0_i32 = arith.constant 0 : i32
    %0 = arith.cmpi eq, %arg1, %c0_i32 : i32
    %1 = arith.extui %0 : i1 to i32
    %c0_i32_0 = arith.constant 0 : i32
    %2 = arith.cmpi ne, %1, %c0_i32_0 : i32
    scf.if %2 {
      %cst_9 = arith.constant 0.000000e+00 : f32
      %12 = vector.broadcast %cst_9 : f32 to vector<8x128xf32>
      %c0_10 = arith.constant 0 : index
      %c0_11 = arith.constant 0 : index
      %13 = vector.load %arg11[%c0_10, %c0_11] : memref<8x128xf32, #tpu.memory_space<vmem>>, vector<8x128xf32>
      tpu.vector_store %arg11[%c0_10, %c0_11], %12 {strides = array<i32>} : memref<8x128xf32, #tpu.memory_space<vmem>>, vector<8x128xf32>,
    } else {
    }
    %c0 = arith.constant 0 : index
    %c0_1 = arith.constant 0 : index
    %3 = vector.load %arg11[%c0, %c0_1] : memref<8x128xf32, #tpu.memory_space<vmem>>, vector<8x128xf32>
    %c0_2 = arith.constant 0 : index
    %c0_3 = arith.constant 0 : index
    %4 = vector.load %arg2[%c0_2, %c0_3] : memref<8x256xbf16, #tpu.memory_space<vmem>>, vector<8x256xbf16>
    %c0_4 = arith.constant 0 : index
    %c0_5 = arith.constant 0 : index
    %5 = vector.load %arg3[%c0_4, %c0_5] : memref<256x128xbf16, #tpu.memory_space<vmem>>, vector<256x128xbf16>
    %cst = arith.constant dense<0.000000e+00> : vector<8x128xf32>
    %6 = tpu.matmul %4, %5, %cst {dimension_numbers = #tpu.dot_dimension_numbers<[1], [0], [0], [1], [0, 0, 1, 1], [], []>} : vector<8x256xbf16>, vector<256x128xbf16>, vector<8x128xf32> -> vector<8x128xf32>
    %7 = arith.addf %3, %6 : vector<8x128xf32>
    %c0_6 = arith.constant 0 : index
    %c0_7 = arith.constant 0 : index
    %8 = vector.load %arg11[%c0_6, %c0_7] : memref<8x128xf32, #tpu.memory_space<vmem>>, vector<8x128xf32>
    tpu.vector_store %arg11[%c0_6, %c0_7], %7 {strides = array<i32>} : memref<8x128xf32, #tpu.memory_space<vmem>>, vector<8x128xf32>,
    %c3_i32 = arith.constant 3 : i32
    %9 = arith.cmpi eq, %arg1, %c3_i32 : i32
    %10 = arith.extui %9 : i1 to i32
    %c0_i32_8 = arith.constant 0 : i32
    %11 = arith.cmpi ne, %10, %c0_i32_8 : i32
    scf.if %11 {
      %c0_9 = arith.constant 0 : index
      %c0_10 = arith.constant 0 : index
      %12 = vector.load %arg11[%c0_9, %c0_10] : memref<8x128xf32, #tpu.memory_space<vmem>>, vector<8x128xf32>
      %c0_11 = arith.constant 0 : index
      %c0_12 = arith.constant 0 : index
      %13 = vector.load %arg4[%c0_11, %c0_12] : memref<1x128xf32, #tpu.memory_space<vmem>>, vector<1x128xf32>
      %14 = vector.broadcast %13 : vector<1x128xf32> to vector<8x128xf32>
      %15 = arith.addf %12, %14 : vector<8x128xf32>
      %16 = arith.truncf %15 : vector<8x128xf32> to vector<8x128xbf16>
      %c0_13 = arith.constant 0 : index
      %c0_14 = arith.constant 0 : index
      %17 = vector.load %arg5[%c0_13, %c0_14] : memref<128x128xbf16, #tpu.memory_space<vmem>>, vector<128x128xbf16>
      %cst_15 = arith.constant dense<0.000000e+00> : vector<8x128xf32>
      %18 = tpu.matmul %16, %17, %cst_15 {dimension_numbers = #tpu.dot_dimension_numbers<[1], [0], [0], [1], [0, 0, 1, 1], [], []>} : vector<8x128xbf16>, vector<128x128xbf16>, vector<8x128xf32> -> vector<8x128xf32>
      %c0_16 = arith.constant 0 : index
      %c0_17 = arith.constant 0 : index
      %19 = vector.load %arg6[%c0_16, %c0_17] : memref<1x128xf32, #tpu.memory_space<vmem>>, vector<1x128xf32>
      %20 = vector.broadcast %19 : vector<1x128xf32> to vector<8x128xf32>
      %21 = arith.addf %18, %20 : vector<8x128xf32>
      %22 = arith.mulf %21, %21 : vector<8x128xf32>
      %23 = arith.mulf %21, %22 : vector<8x128xf32>
      %cst_18 = arith.constant 4.471500e-02 : f32
      %24 = vector.broadcast %cst_18 : f32 to vector<8x128xf32>
      %25 = arith.mulf %24, %23 : vector<8x128xf32>
      %26 = arith.addf %21, %25 : vector<8x128xf32>
      %cst_19 = arith.constant 0.797884583 : f32
      %27 = vector.broadcast %cst_19 : f32 to vector<8x128xf32>
      %28 = arith.mulf %27, %26 : vector<8x128xf32>
      %29 = math.tanh %28 : vector<8x128xf32>
      %cst_20 = arith.constant 1.000000e+00 : f32
      %30 = vector.broadcast %cst_20 : f32 to vector<8x128xf32>
      %31 = arith.addf %30, %29 : vector<8x128xf32>
      %cst_21 = arith.constant 5.000000e-01 : f32
      %32 = vector.broadcast %cst_21 : f32 to vector<8x128xf32>
      %33 = arith.mulf %32, %31 : vector<8x128xf32>
      %34 = arith.mulf %21, %33 : vector<8x128xf32>
      %c0_22 = arith.constant 0 : index
      %c0_23 = arith.constant 0 : index
      %35 = vector.load %arg7[%c0_22, %c0_23] : memref<8x128xf32, #tpu.memory_space<vmem>>, vector<8x128xf32>
      tpu.vector_store %arg7[%c0_22, %c0_23], %15 {strides = array<i32>} : memref<8x128xf32, #tpu.memory_space<vmem>>, vector<8x128xf32>,
      %c0_24 = arith.constant 0 : index
      %c0_25 = arith.constant 0 : index
      %36 = vector.load %arg8[%c0_24, %c0_25] : memref<8x128xf32, #tpu.memory_space<vmem>>, vector<8x128xf32>
      tpu.vector_store %arg8[%c0_24, %c0_25], %34 {strides = array<i32>} : memref<8x128xf32, #tpu.memory_space<vmem>>, vector<8x128xf32>,
      %c0_26 = arith.constant 0 : index
      %c0_27 = arith.constant 0 : index
      %37 = vector.load %arg9[%c0_26, %c0_27] : memref<8x128xbf16, #tpu.memory_space<vmem>>, vector<8x128xbf16>
      tpu.vector_store %arg9[%c0_26, %c0_27], %16 {strides = array<i32>} : memref<8x128xbf16, #tpu.memory_space<vmem>>, vector<8x128xbf16>,
      %38 = arith.truncf %34 : vector<8x128xf32> to vector<8x128xbf16>
      %c0_28 = arith.constant 0 : index
      %c0_29 = arith.constant 0 : index
      %39 = vector.load %arg10[%c0_28, %c0_29] : memref<8x128xbf16, #tpu.memory_space<vmem>>, vector<8x128xbf16>
      tpu.vector_store %arg10[%c0_28, %c0_29], %38 {strides = array<i32>} : memref<8x128xbf16, #tpu.memory_space<vmem>>, vector<8x128xbf16>,
    } else {
    }
    return
  }
  func.func @transform_0(%arg0: i32, %arg1: i32) -> (i32, i32) {
    %c0_i32 = arith.constant 0 : i32
    return %arg0, %arg1 : i32, i32
  }
  func.func @transform_1(%arg0: i32, %arg1: i32) -> (i32, i32) {
    %c0_i32 = arith.constant 0 : i32
    %c0_i32_0 = arith.constant 0 : i32
    return %arg1, %c0_i32 : i32, i32
  }
  func.func @transform_2(%arg0: i32, %arg1: i32) -> (i32, i32) {
    %c0_i32 = arith.constant 0 : i32
    %c0_i32_0 = arith.constant 0 : i32
    %c0_i32_1 = arith.constant 0 : i32
    return %c0_i32, %c0_i32_0 : i32, i32
  }
  func.func @transform_3(%arg0: i32, %arg1: i32) -> (i32, i32) {
    %c0_i32 = arith.constant 0 : i32
    %c0_i32_0 = arith.constant 0 : i32
    %c0_i32_1 = arith.constant 0 : i32
    return %c0_i32, %c0_i32_0 : i32, i32
  }
  func.func @transform_4(%arg0: i32, %arg1: i32) -> (i32, i32) {
    %c0_i32 = arith.constant 0 : i32
    %c0_i32_0 = arith.constant 0 : i32
    %c0_i32_1 = arith.constant 0 : i32
    return %c0_i32, %c0_i32_0 : i32, i32
  }
  func.func @transform_5(%arg0: i32, %arg1: i32) -> (i32, i32) {
    %c0_i32 = arith.constant 0 : i32
    %c0_i32_0 = arith.constant 0 : i32
    return %arg0, %c0_i32 : i32, i32
  }
  func.func @transform_6(%arg0: i32, %arg1: i32) -> (i32, i32) {
    %c0_i32 = arith.constant 0 : i32
    %c0_i32_0 = arith.constant 0 : i32
    return %arg0, %c0_i32 : i32, i32
  }
  func.func @transform_7(%arg0: i32, %arg1: i32) -> (i32, i32) {
    %c0_i32 = arith.constant 0 : i32
    %c0_i32_0 = arith.constant 0 : i32
    return %arg0, %c0_i32 : i32, i32
  }
  func.func @transform_8(%arg0: i32, %arg1: i32) -> (i32, i32) {
    %c0_i32 = arith.constant 0 : i32
    %c0_i32_0 = arith.constant 0 : i32
    return %arg0, %c0_i32 : i32, i32
  }
}

</mosaic_0001>

<bundles_post_ra>
// kernel: tpu_custom_call.1
= control target key start
LH: loop header
LB: loop body
LE: loop exit
PB: predicated region body
PF: predicated region fallthrough
CT: control target
= control target key end

     0   :  { %s1778_s0 = inlined_call_operand.hbm [shape: bf16[8,1024], index: 0, kind: input, shape index: {}]   ;;  %s1779_s1 = inlined_call_operand.hbm [shape: bf16[1024,128], index: 1, kind: input, shape index: {}]   ;;  %s1780_s2 = inlined_call_operand.vmem [shape: f32[1,128], index: 2, kind: input, shape index: {}]   ;;  %s1781_s3 = inlined_call_operand.hbm [shape: bf16[128,128], index: 3, kind: input, shape index: {}]   ;;  %s1782_s4 = inlined_call_operand.vmem [shape: f32[1,128], index: 4, kind: input, shape index: {}]   ;;  %s1783_s5 = inlined_call_operand.hbm [shape: f32[8,128], index: 5, kind: output, shape index: {0}]   ;;  %s1784_s6 = inlined_call_operand.hbm [shape: f32[8,128], index: 6, kind: output, shape index: {1}]   ;;  %s1785_s7 = inlined_call_operand.hbm [shape: bf16[8,128], index: 7, kind: output, shape index: {2}]   ;;  %s1786_s8 = inlined_call_operand.hbm [shape: bf16[8,128], index: 8, kind: output, shape index: {3}]  }
   0x1   :  { %1793 = sst [smem:[#allocation22_spill]] %s1778_s0 }
   0x2   :  { %1794 = sst [smem:[#allocation23_spill]] %s1781_s3 }
   0x3   :  { %14 = vsyncpa [#allocation4], 0 }
   0x4   :  { %16 = vsyncpa [#allocation4 + $0x1], 0 }
   0x5   :  { %17 = vsyncpa [#allocation7], 0 }
   0x6   :  { %19 = vsyncpa [#allocation7 + $0x1], 0 }
   0x7   :  { %20 = vsyncpa [#allocation5], 0 }
   0x8   :  { %21 = vsyncpa [#allocation11], 0 }
   0x9   :  { %22 = vsyncpa [#allocation14], 0  ;;  %s1462_s27 = smov 0   ;;  %s1464_s28 = smov 0  }
   0xa   :  { %s1466_s29 = smov 0   ;;  %s1468_s30 = smov 0  }
   0xb   :  { %s1470_s9 = smov 0   ;;  %s1472_s10 = smov 0  }
   0xc LB: > { %s1491_s11 = sadd.s32 4294967295, %s1403_s10   ;;  %p62_p0 = scmp.ne.s32.totalorder %s1387_s28, %s1383_s27  ;;  %s1403_s10 = sphi %s1472_s10, %s28_s10   ;;  %s1399_s9 = sphi %s1470_s9, %s1814_s9   ;;  %s1395_s30 = sphi %s1468_s30, %s1813_s30   ;;  %s1391_s29 = sphi %s1466_s29, %s1812_s29   ;;  %s1387_s28 = sphi %s1464_s28, %s1811_s28   ;;  %s1383_s27 = sphi %s1462_s27, %s1810_s27  }
   0xd   : > { %p1787_p1 = scmp.eq.s32.totalorder %s1491_s11, 0  ;;  %p903_p2 = scmp.ge.s32.totalorder %s1403_s10, 1 }
   0xe   : > { %p266_p3 = scmp.lt.s32.totalorder %s1403_s10, 5  ;;  %s1405_s14 = smov [#allocation8]  }
   0xf   : > { %p1499_p4 = por %p1787_p1, %p62_p0  ;;  %s281_s15 = sshll.u32 %s1405_s14, 4  ;;  %s282_s15 = int_to_ptr.vmem [resolvable:$true] %s281_s15 }
  0x10   : > { %p1503_p5 = pnand %p903_p2, %p266_p3  ;;  %s37_s17 = sadd.s32 1, %s1399_s9 }
  0x11   : > { %s1795_s12 = scalar_select %p1499_p4, 1, 0 }
  0x12   : > { %s1796_s13 = scalar_select %p1503_p5, 1, 0 }
  0x13   : > { %p1033_p6 = pneg %p1503_p5  ;;  %s1798_s3 = sld [smem:[#allocation23_spill]] }
  0x15   : > { %p1511_p7 = pnand %p1033_p6, %p1787_p1 }
  0x17   : > { %p1143_p9 = pneg %p1511_p7 }
  0x19   : > { %s1141_s20 = scalar_lea.hbm %s1798_s3, 1024 }
  0x1a   : > { %p1142_p8 = scmp.ne.s32.totalorder %s1798_s3, %s1141_s20  ;;  %p1148_p12 = scmp.lt.u32.totalorder %s1141_s20, %s1798_s3 }
  0x1c   : > { %p1144_p10 = pnand %p1143_p9, %p1142_p8 }
  0x1e   : > { %p1145_p11 = pneg %p1144_p10 }
  0x20   : > { %p1150_p13 = pnand %p1148_p12, %p1145_p11 }
  0x22   : > { %1153 = shalt.err (!%p1150_p13)
}
  0x23   : > { %s1154_s25 = scalar_lea.vmem %s282_s15, 1024  ;;  %p1162_p6 = scmp.lt.s32.totalorder %s282_s15, %s282_s15 }
  0x24   : > { %p1155_p0 = scmp.ne.s32.totalorder %s282_s15, %s1154_s25  ;;  %p1163_p1 = scmp.lt.s32.totalorder %s1154_s25, %s1154_s25 }
  0x26   : > { %p1157_p2 = pnand %p1155_p0, %p1143_p9  ;;  %p1164_p4 = por %p1163_p1, %p1162_p6 }
  0x28   : > { %p1158_p3 = pneg %p1157_p2 }
  0x2a   : > { %p1165_p5 = pnand %p1164_p4, %p1158_p3 }
  0x2c   : > { %1168 = shalt.err (!%p1165_p5)
}
  0x2d   : > { %s1790_s26 = smov 64   ;;  %s1791_s27 = smov 4  }
  0x2e   : > { %1036 = dma.hbm_to_vmem [thread:$0]  (!%p1511_p7), %s1798_s3, 1024, %s282_s15, [#allocation7], %s1790_s26, %s1790_s26, %s1791_s27  }
  0x2f   : > { %p38_p1 = scmp.ge.s32.totalorder %s37_s17, 4  ;;  %s49_s19 = sadd.s32 1, %s1391_s29 }
  0x30   : > { %p56_p4 = scmp.ne.s32.totalorder %s1391_s29, %s1387_s28  ;;  %p57_p5 = scmp.eq.s32.totalorder %s1403_s10, 0 }
  0x31   : > { %s1816_s17 = smov (%p38_p1, %s37_s17), 0  ;;  %p1045_p9 = scmp.lt.s32.totalorder %s1403_s10, 4 }
  0x32   : > { %1799 = sst [smem:[#allocation21_spill]] %s1816_s17  ;;  %p58_p8 = por %p57_p5, %p56_p4 }
  0x33   : > { %s45_s20 = ssub.s32 %s1399_s9, %s1816_s17  ;;  %s1545_s21 = sand.u32 1, %s1391_s29  }
  0x34   : > { %p47_p10 = scmp.eq.s32.totalorder %s45_s20, 0  ;;  %s906_s16 = sshll.u32 %s1545_s21, 3 }
  0x35   : > { %s956_s22 = sshll.u32 %s1399_s9, 7  ;;  %s1800_s0 = sld [smem:[#allocation22_spill]] }
  0x36   : > { %s1550_s23 = scalar_select %p47_p10, %s1391_s29, %s49_s19  }
  0x37   : > { %s302_s14 = scalar_lea.vmem [#allocation3], %s906_s16  ;;  %p1557_p7 = pnand %p1045_p9, %p58_p8 }
  0x38   : > { %s312_s18 = sshll.u32 %s302_s14, 4  ;;  %s299_s20 = scalar_lea.sflag [#allocation4], %s1545_s21  ;;  %s1561_s18 = int_to_ptr.vmem [resolvable:$true] %s312_s18 }
  0x39   : > { %p1171_p12 = pneg %p1557_p7 }
  0x3b   : > { %s1555_s25 = scalar_lea.hbm %s1800_s0, %s956_s22  ;;  %s1174_s15 = scalar_lea.hbm %s1800_s0, 512 }
  0x3c   : > { %s1169_s27 = scalar_lea.hbm %s1555_s25, 128  ;;  %p1175_p2 = scmp.lt.u32.totalorder %s1555_s25, %s1800_s0 }
  0x3d   : > { %p1170_p11 = scmp.ne.s32.totalorder %s1555_s25, %s1169_s27  ;;  %p1176_p3 = scmp.lt.u32.totalorder %s1174_s15, %s1169_s27 }
  0x3e   : > { %p1178_p1 = scmp.lt.u32.totalorder %s1169_s27, %s1555_s25 }
  0x3f   : > { %p1172_p13 = pnand %p1171_p12, %p1170_p11  ;;  %p1177_p6 = por %p1176_p3, %p1175_p2 }
  0x41   : > { %p1173_p0 = pneg %p1172_p13  ;;  %p1179_p4 = por %p1178_p1, %p1177_p6 }
  0x43   : > { %p1180_p5 = pnand %p1179_p4, %p1173_p0 }
  0x45   : > { %1183 = shalt.err (!%p1180_p5)
}
  0x46   : > { %s1184_s19 = scalar_lea.vmem %s1561_s18, 128  ;;  %s1408_s16 = smov [#allocation3]  }
  0x47   : > { %p1185_p8 = scmp.ne.s32.totalorder %s1561_s18, %s1184_s19  ;;  %s1189_s22 = sshll.u32 %s1408_s16, 4  ;;  %s1190_s22 = int_to_ptr.vmem [resolvable:$false] %s1189_s22 }
  0x48   : > { %s1191_s24 = scalar_lea.vmem %s1190_s22, 256  ;;  %p1192_p11 = scmp.lt.s32.totalorder %s1561_s18, %s1190_s22 }
  0x49   : > { %p1187_p9 = pnand %p1185_p8, %p1171_p12  ;;  %p1193_p13 = scmp.lt.s32.totalorder %s1191_s24, %s1184_s19 }
  0x4b   : > { %p1188_p10 = pneg %p1187_p9  ;;  %p1194_p2 = por %p1193_p13, %p1192_p11 }
  0x4d   : > { %p1195_p3 = pnand %p1194_p2, %p1188_p10 }
  0x4f   : > { %1198 = shalt.err (!%p1195_p3)
}
  0x50   : > { %1040 = dma.hbm_to_vmem [thread:$0]  (!%p1557_p7), %s1555_s25, 128, %s1561_s18, %s299_s20  }
  0x51   : > { %s957_s27 = sshll.u32 %s1399_s9, 11  ;;  %s1802_s15 = sshll.u32 %s1545_s21, 7 }
  0x52   : > { %s323_s14 = scalar_lea.vmem [#allocation6], %s1802_s15  ;;  %s319_s22 = sand.u32 1, %s1403_s10  }
  0x53   : > { %s330_s16 = sshll.u32 %s323_s14, 4  ;;  %s1599_s0 = scalar_lea.hbm %s1779_s1, %s957_s27  ;;  %s1593_s16 = int_to_ptr.vmem [resolvable:$true] %s330_s16 }
  0x54   : > { %s1601_s3 = scalar_lea.sflag [#allocation7], %s319_s22  ;;  %s1199_s17 = scalar_lea.hbm %s1599_s0, 2048 }
  0x55   : > { %p1200_p0 = scmp.ne.s32.totalorder %s1599_s0, %s1199_s17  ;;  %s1204_s18 = scalar_lea.hbm %s1779_s1, 8192 }
  0x56   : > { %p1205_p4 = scmp.lt.u32.totalorder %s1599_s0, %s1779_s1  ;;  %p1206_p5 = scmp.lt.u32.totalorder %s1204_s18, %s1199_s17 }
  0x57   : > { %p1202_p6 = pnand %p1200_p0, %p1171_p12  ;;  %p1208_p9 = scmp.lt.u32.totalorder %s1199_s17, %s1599_s0 }
  0x58   : > { %p1207_p8 = por %p1206_p5, %p1205_p4 }
  0x59   : > { %p1203_p1 = pneg %p1202_p6 }
  0x5a   : > { %p1209_p10 = por %p1208_p9, %p1207_p8 }
  0x5c   : > { %p1210_p11 = pnand %p1209_p10, %p1203_p1 }
  0x5e   : > { %1213 = shalt.err (!%p1210_p11)
}
  0x5f   : > { %s1214_s27 = scalar_lea.vmem %s1593_s16, 2048  ;;  %s1409_s14 = smov [#allocation6]  }
  0x60   : > { %p1215_p13 = scmp.ne.s32.totalorder %s1593_s16, %s1214_s27  ;;  %s1219_s22 = sshll.u32 %s1409_s14, 4  ;;  %s1220_s22 = int_to_ptr.vmem [resolvable:$false] %s1219_s22 }
  0x61   : > { %s1221_s19 = scalar_lea.vmem %s1220_s22, 4096  ;;  %p1222_p0 = scmp.lt.s32.totalorder %s1593_s16, %s1220_s22 }
  0x62   : > { %p1217_p2 = pnand %p1215_p13, %p1171_p12  ;;  %p1223_p6 = scmp.lt.s32.totalorder %s1221_s19, %s1214_s27 }
  0x64   : > { %p1218_p3 = pneg %p1217_p2  ;;  %p1224_p4 = por %p1223_p6, %p1222_p0 }
  0x66   : > { %p1225_p5 = pnand %p1224_p4, %p1218_p3 }
  0x68   : > { %1228 = shalt.err (!%p1225_p5)
}
  0x69   : > { %s1803_s17 = smov 4   ;;  %s1804_s24 = smov 64  }
  0x6a   : > { %1043 = dma.hbm_to_vmem [thread:$0]  (!%p1557_p7), %s1599_s0, 2048, %s1593_s16, %s1601_s3, %s1804_s24, %s1804_s24, %s1803_s17  }
  0x6b   : > { %p1805_p12 = scmp.ne.s32.totalorder %s1796_s13, 0 }
  0x6c   : > { %s344_s21 = sand.u32 (!%p1805_p12), 1, %s1387_s28   ;;  %p1806_p1 = scmp.ne.s32.totalorder (!%p1805_p12), %s1795_s12, 0 }
  0x6d   : > { %342 = sbr.rel (%p1805_p12) target bundleno = 734 (0x2de), region = 40  ;;  %s913_s25 = sshll.u32 (!%p1805_p12), %s344_s21, 3 }
  0x6e   : > { %s345_s18 = scalar_lea.sflag (!%p1805_p12), [#allocation4], %s344_s21  ;;  %s1633_s20 = scalar_lea.vmem (!%p1805_p12), [#allocation3], %s913_s25 }
  0x74   : > { %1358 = dma.done.wait (%p1806_p1), %s345_s18, 128  }
  0x75   : > { %1360 = vsyncadd (%p1806_p1), %s345_s18, 4294967168  ;;  %s353_s26 = sand.u32 1, %s1491_s11   ;;  %s914_s15 = sshll.u32 %s344_s21, 7 }
  0x76   : > { %s354_s0 = scalar_lea.sflag [#allocation7], %s353_s26  ;;  %s1640_s3 = scalar_lea.vmem [#allocation6], %s914_s15 }
  0x77   : > { %1362 = dma.done.wait (%p1806_p1), %s354_s0, 2048  }
  0x78   : > { %1364 = vsyncadd (%p1806_p1), %s354_s0, 4294965248  ;;  %p1807_p7 = scmp.eq.s32.totalorder %s1491_s11, 0 }
  0x7a   : > { %1366 = dma.done.wait (%p1807_p7), [#allocation7], 1024   ;;  %p1808_p8 = pmov %p1807_p7 }
  0x7b   : > { %p916_p9 = scmp.ne.s32.totalorder %s1395_s30, 0 }
  0x7c   : > { %1368 = vsyncadd (%p1808_p8), [#allocation7], 4294966272  ;;  %v1410_v0 = vmov (!%p916_p9), 0.0  }
  0x7d   : > { %400 = sbr.rel (%p916_p9) target bundleno = 132 (0x84), region = 56  ;;  %401 = vst [vmem:[#allocation2] sm:$0xff] (!%p916_p9), %v1410_v0 }
  0x84 PF: > { %v1113_v1 = vld [vmem:[%s1640_s3 + $0x40] sm:$0xff]   ;;  %v1115_v3 = vld [vmem:[%s1640_s3 + $0x48] sm:$0xff]   ;;  %v1117_v5 = vld [vmem:[%s1640_s3 + $0x50] sm:$0xff]   ;;  %p935_p10 = scmp.ne.s32.totalorder %s1395_s30, 3 }
  0x85   : > { %v1114_v2 = vld [vmem:[%s1640_s3] sm:$0xff]   ;;  %958 = vmatprep.subr.bf16.mxu0 %v1113_v1  ;;  %v1116_v4 = vld [vmem:[%s1640_s3 + $0x8] sm:$0xff]   ;;  %v1118_v6 = vld [vmem:[%s1640_s3 + $0x10] sm:$0xff]   ;;  %v1411_v28 = vmov (!%p935_p10), 0.0   ;;  %vm1412_vm0 = vmmov (!%p935_p10), 0  }
  0x86   : > { %959 = vmatpush3.bf16.msra.mxu0 %v1114_v2  ;;  %v1119_v7 = vld [vmem:[%s1640_s3 + $0x58] sm:$0xff]   ;;  %v1121_v9 = vld [vmem:[%s1640_s3 + $0x60] sm:$0xff]   ;;  %v1123_v11 = vld [vmem:[%s1640_s3 + $0x68] sm:$0xff]  }
  0x87   : > { %960 = vmatprep.subr.bf16.mxu0 %v1115_v3  ;;  %v1120_v8 = vld [vmem:[%s1640_s3 + $0x18] sm:$0xff]   ;;  %v1122_v10 = vld [vmem:[%s1640_s3 + $0x20] sm:$0xff]   ;;  %v1124_v14 = vld [vmem:[%s1640_s3 + $0x28] sm:$0xff]  }
  0x88   : > { %v403_v12 = vld [vmem:[%s1633_s20] sm:$0xff]  ;;  %v402_v21 = vld [vmem:[#allocation2] sm:$0xff]  ;;  %v1131_v27 = vld [vmem:[#allocation8] sm:$0xff] (!%p935_p10)  }
  0x89   : > { %v918_v13 = vcombine.high %v403_v12, %v403_v12  ;;  %v1125_v15 = vld [vmem:[%s1640_s3 + $0x70] sm:$0xff]   ;;  %v1127_v17 = vld [vmem:[%s1640_s3 + $0x78] sm:$0xff]   ;;  %v917_v19 = vcombine.low %v403_v12, %v403_v12  ;;  %v1132_v29 = vld [vmem:[#allocation8 + $0x8] sm:$0xff] (!%p935_p10)  }
  0x8a   : > { %961 = vmatpush3.bf16.msra.mxu0 %v1116_v4  ;;  %v1126_v16 = vld [vmem:[%s1640_s3 + $0x30] sm:$0xff]   ;;  %v1128_v18 = vld [vmem:[%s1640_s3 + $0x38] sm:$0xff]   ;;  %v936_v32 = vld [vmem:[%s1780_s2] ss:$0 sm:$0xff] (!%p935_p10) }
  0x8b   : > { %962 = vmatprep.subr.bf16.mxu0 %v1117_v5  ;;  %571 = vmatprep.mubr.bf16.mxu0 %v918_v13  ;;  %v1133_v30 = vld [vmem:[#allocation8 + $0x10] sm:$0xff] (!%p935_p10)   ;;  %v1134_v34 = vld [vmem:[#allocation8 + $0x18] sm:$0xff] (!%p935_p10)   ;;  %v1135_v36 = vld [vmem:[#allocation8 + $0x20] sm:$0xff] (!%p935_p10)  }
  0x8c   : > { %v1136_v37 = vld [vmem:[#allocation8 + $0x28] sm:$0xff] (!%p935_p10)   ;;  %v1137_v38 = vld [vmem:[#allocation8 + $0x30] sm:$0xff] (!%p935_p10)   ;;  %v1138_v39 = vld [vmem:[#allocation8 + $0x38] sm:$0xff] (!%p935_p10)  }
  0x8d   : > { %v937_v40 = vld [vmem:[%s1782_s4] ss:$0 sm:$0xff] (!%p935_p10) }
  0x8e   : > { %963 = vmatpush3.bf16.msra.mxu0 %v1118_v6 }
  0x8f   : > { %964 = vmatprep.subr.bf16.mxu0 %v1119_v7 }
  0x92   : > { %965 = vmatpush3.bf16.msra.mxu0 %v1120_v8 }
  0x93   : > { %966 = vmatprep.subr.bf16.mxu0 %v1121_v9 }
  0x96   : > { %967 = vmatpush3.bf16.msra.mxu0 %v1122_v10 }
  0x97   : > { %968 = vmatprep.subr.bf16.mxu0 %v1123_v11 }
  0x9a   : > { %969 = vmatpush3.bf16.msra.mxu0 %v1124_v14 }
  0x9b   : > { %970 = vmatprep.subr.bf16.mxu0 %v1125_v15 }
  0x9e   : > { %971 = vmatpush3.bf16.msra.mxu0 %v1126_v16 }
  0x9f   : > { %972 = vmatprep.subr.bf16.mxu0 %v1127_v17 }
  0xa2   : > { %973 = vmatpush3.bf16.msra.mxu0 %v1128_v18 }
  0xa3   : > { %989 = vmatprep.subr.bf16.mxu0 (!%p935_p10), %v1411_v28 }
  0xa5   : > { %572 = vmatmul.mubr.bf16.vlgmr.msra.gmra.mrb[0].mxu0 %v917_v19 }
  0xa6   : > { %990 = vmatpush3.bf16.msra.mxu0 (!%p935_p10), %v1131_v27  ;;  %1005 = vmatprep.mubr.msk.bf16.mxu0 (!%p935_p10), %vm1412_vm0, %v1411_v28 }
  0xa7   : > { %991 = vmatprep.subr.bf16.mxu0 (!%p935_p10), %v1411_v28 }
  0xaa   : > { %992 = vmatpush3.bf16.msra.mxu0 (!%p935_p10), %v1132_v29 }
  0xab   : > { %993 = vmatprep.subr.bf16.mxu0 (!%p935_p10), %v1411_v28 }
  0xae   : > { %994 = vmatpush3.bf16.msra.mxu0 (!%p935_p10), %v1133_v30 }
  0xaf   : > { %995 = vmatprep.subr.bf16.mxu0 (!%p935_p10), %v1411_v28 }
  0xb2   : > { %996 = vmatpush3.bf16.msra.mxu0 (!%p935_p10), %v1134_v34 }
  0xb3   : > { %997 = vmatprep.subr.bf16.mxu0 (!%p935_p10), %v1411_v28 }
  0xb6   : > { %998 = vmatpush3.bf16.msra.mxu0 (!%p935_p10), %v1135_v36 }
  0xb7   : > { %999 = vmatprep.subr.bf16.mxu0 (!%p935_p10), %v1411_v28 }
  0xba   : > { %1000 = vmatpush3.bf16.msra.mxu0 (!%p935_p10), %v1136_v37 }
  0xbb   : > { %1001 = vmatprep.subr.bf16.mxu0 (!%p935_p10), %v1411_v28 }
  0xbe   : > { %1002 = vmatpush3.bf16.msra.mxu0 (!%p935_p10), %v1137_v38 }
  0xbf   : > { %1003 = vmatprep.subr.bf16.mxu0 (!%p935_p10), %v1411_v28 }
  0xc2   : > { %1004 = vmatpush3.bf16.msra.mxu0 (!%p935_p10), %v1138_v39 }
 0x178   : > { %v974_v20 = vpop.f32.mrb[0].mxu0  ;;  %584 = sbr.rel (%p935_p10) target bundleno = 638 (0x27e), region = 60 }
 0x179   : > { %v975_v22 = vpop.f32.mrb[1].mxu0 }
 0x17a   : > { %v976_v23 = vadd.f32 %v975_v22, %v974_v20  ;;  %v977_v24 = vpop.f32.mrb[2].mxu0 }
 0x17b   : > { %v978_v25 = vpop.f32.mrb[3].mxu0 }
 0x17c   : > { %v579_v26 = vadd.f32 %v976_v23, %v402_v21 }
 0x17e   : > { %580 = vst [vmem:[#allocation2] sm:$0xff] %v579_v26 }
 0x185   : > { %v585_v31 = vld [vmem:[#allocation2] sm:$0xff] }
 0x186   : > { %v593_v33 = vadd.f32 %v936_v32, %v585_v31 }
 0x188   : > { %v594_v35 = vpack.c.bf16 %v593_v33, %v593_v33  ;;  %715 = vst [vmem:[#allocation9] sm:$0xff] %v593_v33 }
 0x18a   : > { %717 = vst [vmem:[#allocation12] sm:$0xf] %v594_v35  ;;  %1006 = vmatmul.mubr.bf16.vlgmr.msra.gmra.mrb[0].mxu0 %v594_v35 }
 0x25d   : > { %v700_v41 = vpop.f32.mrb[0].mxu0 }
 0x25e   : > { %v701_v42 = vadd.f32 %v937_v40, %v700_v41  ;;  %v1007_v43 = vpop.f32.mrb[1].mxu0 }
 0x25f   : > { %v703_v44 = vpop.f32.mrb[2].mxu0 }
 0x260   : > { %v706_v45 = vmul.f32 %v701_v42, %v701_v42  ;;  %v1008_v46 = vpop.f32.mrb[3].mxu0 }
 0x262   : > { %v707_v47 = vmul.f32 %v706_v45, %v701_v42 }
 0x264   : > { %v708_v48 = vmul.f32 0.044715, %v707_v47 }
 0x266   : > { %v709_v49 = vadd.f32 %v708_v48, %v701_v42 }
 0x268   : > { %v710_v50 = vmul.f32 0.7978846, %v709_v49 }
 0x26a   : > { %1139 = vtanh.f32 %v710_v50 }
 0x274   : > { %v1140_v51 = vpop.eup %1139 }
 0x275   : > { %v712_v52 = vadd.f32 1.0, %v1140_v51 }
 0x277   : > { %v713_v53 = vmul.f32 0.5, %v712_v52 }
 0x279   : > { %v714_v54 = vmul.f32 %v713_v53, %v701_v42 }
 0x27b   : > { %716 = vst [vmem:[#allocation10] sm:$0xff] %v714_v54  ;;  %v718_v55 = vpack.c.bf16 %v714_v54, %v714_v54 }
 0x27d   : > { %719 = vst [vmem:[#allocation13] sm:$0xf] %v718_v55 }
 0x27e PF: > { %p1047_p11 = scmp.eq.s32.totalorder %s1491_s11, 3  ;;  %s1413_s27 = smov [#allocation10]  }
 0x27f   : > { %s742_s14 = sshll.u32 %s1413_s27, 4  ;;  %s743_s14 = int_to_ptr.vmem [resolvable:$true] %s742_s14 }
 0x280   : > { %s1229_s22 = scalar_lea.vmem %s743_s14, 128  ;;  %p1236_p0 = scmp.lt.s32.totalorder %s743_s14, %s743_s14 }
 0x281   : > { %p1230_p13 = scmp.ne.s32.totalorder %s743_s14, %s1229_s22  ;;  %p1237_p6 = scmp.lt.s32.totalorder %s1229_s22, %s1229_s22 }
 0x283   : > { %p1231_p2 = pnand %p1230_p13, %p1047_p11  ;;  %p1238_p4 = por %p1237_p6, %p1236_p0 }
 0x285   : > { %p1232_p3 = pneg %p1231_p2 }
 0x287   : > { %p1239_p5 = pnand %p1238_p4, %p1232_p3 }
 0x289   : > { %1242 = shalt.err (!%p1239_p5)
}
 0x28a   : > { %s1243_s24 = scalar_lea.hbm %s1784_s6, 128 }
 0x28b   : > { %p1244_p12 = scmp.ne.s32.totalorder %s1784_s6, %s1243_s24  ;;  %p1249_p8 = scmp.lt.u32.totalorder %s1243_s24, %s1784_s6 }
 0x28d   : > { %p1245_p1 = pnand %p1244_p12, %p1047_p11 }
 0x28f   : > { %p1246_p7 = pneg %p1245_p1 }
 0x291   : > { %p1251_p9 = pnand %p1249_p8, %p1246_p7 }
 0x293   : > { %1254 = shalt.err (!%p1251_p9)
}
 0x294   : > { %1020 = dma.vmem_to_hbm [thread:$0]  (%p1047_p11), %s743_s14, 128, %s1784_s6, [#allocation11]  }
 0x295   : > { %s1414_s0 = smov [#allocation9]   ;;  %s1415_s12 = smov [#allocation12]  }
 0x296   : > { %s729_s3 = sshll.u32 %s1414_s0, 4  ;;  %s755_s13 = sshll.u32 %s1415_s12, 4  ;;  %s730_s3 = int_to_ptr.vmem [resolvable:$true] %s729_s3  ;;  %s756_s13 = int_to_ptr.vmem [resolvable:$true] %s755_s13 }
 0x297   : > { %s1255_s30 = scalar_lea.vmem %s730_s3, 128  ;;  %p1262_p3 = scmp.lt.s32.totalorder %s730_s3, %s730_s3 }
 0x298   : > { %p1256_p10 = scmp.ne.s32.totalorder %s730_s3, %s1255_s30  ;;  %p1263_p0 = scmp.lt.s32.totalorder %s1255_s30, %s1255_s30 }
 0x29a   : > { %p1257_p13 = pnand %p1256_p10, %p1047_p11  ;;  %p1264_p6 = por %p1263_p0, %p1262_p3 }
 0x29c   : > { %p1258_p2 = pneg %p1257_p13 }
 0x29e   : > { %p1265_p4 = pnand %p1264_p6, %p1258_p2 }
 0x2a0   : > { %1268 = shalt.err (!%p1265_p4)
}
 0x2a1   : > { %s1269_s14 = scalar_lea.hbm %s1783_s5, 128 }
 0x2a2   : > { %p1270_p5 = scmp.ne.s32.totalorder %s1783_s5, %s1269_s14  ;;  %p1275_p7 = scmp.lt.u32.totalorder %s1269_s14, %s1783_s5 }
 0x2a4   : > { %p1271_p12 = pnand %p1270_p5, %p1047_p11 }
 0x2a6   : > { %p1272_p1 = pneg %p1271_p12 }
 0x2a8   : > { %p1277_p8 = pnand %p1275_p7, %p1272_p1 }
 0x2aa   : > { %1280 = shalt.err (!%p1277_p8)
}
 0x2ab   : > { %1018 = dma.vmem_to_hbm [thread:$0]  (%p1047_p11), %s730_s3, 128, %s1783_s5, [#allocation5]  }
 0x2ac   : > { %s1281_s18 = scalar_lea.vmem %s756_s13, 64  ;;  %p1288_p2 = scmp.lt.s32.totalorder %s756_s13, %s756_s13 }
 0x2ad   : > { %p1282_p9 = scmp.ne.s32.totalorder %s756_s13, %s1281_s18  ;;  %p1289_p3 = scmp.lt.s32.totalorder %s1281_s18, %s1281_s18 }
 0x2af   : > { %p1283_p10 = pnand %p1282_p9, %p1047_p11  ;;  %p1290_p0 = por %p1289_p3, %p1288_p2 }
 0x2b1   : > { %p1284_p13 = pneg %p1283_p10 }
 0x2b3   : > { %p1291_p6 = pnand %p1290_p0, %p1284_p13 }
 0x2b5   : > { %1294 = shalt.err (!%p1291_p6)
}
 0x2b6   : > { %s1295_s15 = scalar_lea.hbm %s1785_s7, 64 }
 0x2b7   : > { %p1296_p4 = scmp.ne.s32.totalorder %s1785_s7, %s1295_s15  ;;  %p1301_p1 = scmp.lt.u32.totalorder %s1295_s15, %s1785_s7 }
 0x2b9   : > { %p1297_p5 = pnand %p1296_p4, %p1047_p11 }
 0x2bb   : > { %p1298_p12 = pneg %p1297_p5 }
 0x2bd   : > { %p1303_p7 = pnand %p1301_p1, %p1298_p12 }
 0x2bf   : > { %1306 = shalt.err (!%p1303_p7)
}
 0x2c0   : > { %1022 = dma.vmem_to_hbm [thread:$0]  (%p1047_p11), %s756_s13, 64, %s1785_s7, [#allocation11]  }
 0x2c1   : > { %s1416_s14 = smov [#allocation13]  }
 0x2c2   : > { %s768_s22 = sshll.u32 %s1416_s14, 4  ;;  %s769_s22 = int_to_ptr.vmem [resolvable:$true] %s768_s22 }
 0x2c3   : > { %s1307_s19 = scalar_lea.vmem %s769_s22, 64  ;;  %p1314_p13 = scmp.lt.s32.totalorder %s769_s22, %s769_s22 }
 0x2c4   : > { %p1308_p8 = scmp.ne.s32.totalorder %s769_s22, %s1307_s19  ;;  %p1315_p2 = scmp.lt.s32.totalorder %s1307_s19, %s1307_s19 }
 0x2c6   : > { %p1309_p9 = pnand %p1308_p8, %p1047_p11  ;;  %p1316_p3 = por %p1315_p2, %p1314_p13 }
 0x2c8   : > { %p1310_p10 = pneg %p1309_p9 }
 0x2ca   : > { %p1317_p0 = pnand %p1316_p3, %p1310_p10 }
 0x2cc   : > { %1320 = shalt.err (!%p1317_p0)
}
 0x2cd   : > { %s1321_s21 = scalar_lea.hbm %s1786_s8, 64 }
 0x2ce   : > { %p1322_p6 = scmp.ne.s32.totalorder %s1786_s8, %s1321_s21  ;;  %p1327_p12 = scmp.lt.u32.totalorder %s1321_s21, %s1786_s8 }
 0x2d0   : > { %p1323_p4 = pnand %p1322_p6, %p1047_p11 }
 0x2d2   : > { %p1324_p5 = pneg %p1323_p4 }
 0x2d4   : > { %p1329_p1 = pnand %p1327_p12, %p1324_p5 }
 0x2d6   : > { %1332 = shalt.err (!%p1329_p1)
}
 0x2d7   : > { %1024 = dma.vmem_to_hbm [thread:$0]  (%p1047_p11), %s769_s22, 64, %s1786_s8, [#allocation14]  }
 0x2d8   : > { %1370 = dma.done.wait (%p1047_p11), [#allocation5], 128  }
 0x2d9   : > { %1372 = vsyncadd (%p1047_p11), [#allocation5], 4294967168 }
 0x2da   : > { %1374 = dma.done.wait (%p1047_p11), [#allocation11], 192  }
 0x2db   : > { %1376 = vsyncadd (%p1047_p11), [#allocation11], 4294967104 }
 0x2dc   : > { %1378 = dma.done.wait (%p1047_p11), [#allocation14], 64  }
 0x2dd   : > { %1380 = vsyncadd (%p1047_p11), [#allocation14], 4294967232 }
 0x2de PF: > { %s28_s10 = sadd.s32 1, %s1403_s10   ;;  %s1809_s0 = sld [smem:[#allocation21_spill]] }
 0x2df   : > { %p25_p7 = scmp.ge.s32.totalorder %s28_s10, 6   ;;  %s1810_s27 = smov %s1387_s28 }
 0x2e0   : > { %s1811_s28 = smov %s1391_s29  ;;  %s1812_s29 = smov %s1550_s23 }
 0x2e1   : > { %s1813_s30 = smov %s1399_s9  ;;  %27 = sbr.rel (!%p25_p7) target bundleno = 12 (0xc), region = 130 }
 0x2e4   : > { %s1814_s9 = smov %s1809_s0 }
 0x2e8   :  { %793 = vsyncpa [#allocation4], 1 }
 0x2e9   :  { %795 = vsyncpa [#allocation4 + $0x1], 1 }
 0x2ea   :  { %796 = vsyncpa [#allocation7], 1 }
 0x2eb   :  { %798 = vsyncpa [#allocation7 + $0x1], 1 }
 0x2ec   :  { %799 = vsyncpa [#allocation5], 1 }
 0x2ed   :  { %801 = vsyncpa [#allocation5 + $0x1], 1 }
 0x2ee   :  { %802 = vsyncpa [#allocation11], 1 }
 0x2ef   :  { %803 = vsyncpa [#allocation14], 1 }

// kernel: tpu_custom_call.1
= control target key start
LH: loop header
LB: loop body
LE: loop exit
PB: predicated region body
PF: predicated region fallthrough
CT: control target
= control target key end

     0   :  { %s1778_s0 = inlined_call_operand.hbm [shape: bf16[8,1024], index: 0, kind: input, shape index: {}]   ;;  %s1779_s1 = inlined_call_operand.hbm [shape: bf16[1024,128], index: 1, kind: input, shape index: {}]   ;;  %s1780_s2 = inlined_call_operand.vmem [shape: f32[1,128], index: 2, kind: input, shape index: {}]   ;;  %s1781_s3 = inlined_call_operand.hbm [shape: bf16[128,128], index: 3, kind: input, shape index: {}]   ;;  %s1782_s4 = inlined_call_operand.vmem [shape: f32[1,128], index: 4, kind: input, shape index: {}]   ;;  %s1783_s5 = inlined_call_operand.hbm [shape: f32[8,128], index: 5, kind: output, shape index: {0}]   ;;  %s1784_s6 = inlined_call_operand.hbm [shape: f32[8,128], index: 6, kind: output, shape index: {1}]   ;;  %s1785_s7 = inlined_call_operand.hbm [shape: bf16[8,128], index: 7, kind: output, shape index: {2}]   ;;  %s1786_s8 = inlined_call_operand.hbm [shape: bf16[8,128], index: 8, kind: output, shape index: {3}]  }
   0x1   :  { %1793 = sst [smem:[#allocation22_spill]] %s1778_s0 }
   0x2   :  { %1794 = sst [smem:[#allocation23_spill]] %s1781_s3 }
   0x3   :  { %14 = vsyncpa [#allocation4], 0 }
   0x4   :  { %16 = vsyncpa [#allocation4 + $0x1], 0 }
   0x5   :  { %17 = vsyncpa [#allocation7], 0 }
   0x6   :  { %19 = vsyncpa [#allocation7 + $0x1], 0 }
   0x7   :  { %20 = vsyncpa [#allocation5], 0 }
   0x8   :  { %21 = vsyncpa [#allocation11], 0 }
   0x9   :  { %22 = vsyncpa [#allocation14], 0  ;;  %s1462_s27 = smov 0   ;;  %s1464_s28 = smov 0  }
   0xa   :  { %s1466_s29 = smov 0   ;;  %s1468_s30 = smov 0  }
   0xb   :  { %s1470_s9 = smov 0   ;;  %s1472_s10 = smov 0  }
   0xc LB: > { %s1491_s11 = sadd.s32 4294967295, %s1403_s10   ;;  %p62_p0 = scmp.ne.s32.totalorder %s1387_s28, %s1383_s27  ;;  %s1403_s10 = sphi %s1472_s10, %s28_s10   ;;  %s1399_s9 = sphi %s1470_s9, %s1814_s9   ;;  %s1395_s30 = sphi %s1468_s30, %s1813_s30   ;;  %s1391_s29 = sphi %s1466_s29, %s1812_s29   ;;  %s1387_s28 = sphi %s1464_s28, %s1811_s28   ;;  %s1383_s27 = sphi %s1462_s27, %s1810_s27  }
   0xd   : > { %p1787_p1 = scmp.eq.s32.totalorder %s1491_s11, 0  ;;  %p903_p2 = scmp.ge.s32.totalorder %s1403_s10, 1 }
   0xe   : > { %p266_p3 = scmp.lt.s32.totalorder %s1403_s10, 5  ;;  %s1405_s14 = smov [#allocation8]  }
   0xf   : > { %p1499_p4 = por %p1787_p1, %p62_p0  ;;  %s281_s15 = sshll.u32 %s1405_s14, 4  ;;  %s282_s15 = int_to_ptr.vmem [resolvable:$true] %s281_s15 }
  0x10   : > { %p1503_p5 = pnand %p903_p2, %p266_p3  ;;  %s37_s17 = sadd.s32 1, %s1399_s9 }
  0x11   : > { %s1795_s12 = scalar_select %p1499_p4, 1, 0 }
  0x12   : > { %s1796_s13 = scalar_select %p1503_p5, 1, 0 }
  0x13   : > { %p1033_p6 = pneg %p1503_p5  ;;  %s1798_s3 = sld [smem:[#allocation23_spill]] }
  0x15   : > { %p1511_p7 = pnand %p1033_p6, %p1787_p1 }
  0x17   : > { %p1143_p9 = pneg %p1511_p7 }
  0x19   : > { %s1141_s20 = scalar_lea.hbm %s1798_s3, 1024 }
  0x1a   : > { %p1142_p8 = scmp.ne.s32.totalorder %s1798_s3, %s1141_s20  ;;  %p1148_p12 = scmp.lt.u32.totalorder %s1141_s20, %s1798_s3 }
  0x1c   : > { %p1144_p10 = pnand %p1143_p9, %p1142_p8 }
  0x1e   : > { %p1145_p11 = pneg %p1144_p10 }
  0x20   : > { %p1150_p13 = pnand %p1148_p12, %p1145_p11 }
  0x22   : > { %1153 = shalt.err (!%p1150_p13)
}
  0x23   : > { %s1154_s25 = scalar_lea.vmem %s282_s15, 1024  ;;  %p1162_p6 = scmp.lt.s32.totalorder %s282_s15, %s282_s15 }
  0x24   : > { %p1155_p0 = scmp.ne.s32.totalorder %s282_s15, %s1154_s25  ;;  %p1163_p1 = scmp.lt.s32.totalorder %s1154_s25, %s1154_s25 }
  0x26   : > { %p1157_p2 = pnand %p1155_p0, %p1143_p9  ;;  %p1164_p4 = por %p1163_p1, %p1162_p6 }
  0x28   : > { %p1158_p3 = pneg %p1157_p2 }
  0x2a   : > { %p1165_p5 = pnand %p1164_p4, %p1158_p3 }
  0x2c   : > { %1168 = shalt.err (!%p1165_p5)
}
  0x2d   : > { %s1790_s26 = smov 64   ;;  %s1791_s27 = smov 4  }
  0x2e   : > { %1036 = dma.hbm_to_vmem [thread:$0]  (!%p1511_p7), %s1798_s3, 1024, %s282_s15, [#allocation7], %s1790_s26, %s1790_s26, %s1791_s27  }
  0x2f   : > { %p38_p1 = scmp.ge.s32.totalorder %s37_s17, 4  ;;  %s49_s19 = sadd.s32 1, %s1391_s29 }
  0x30   : > { %p56_p4 = scmp.ne.s32.totalorder %s1391_s29, %s1387_s28  ;;  %p57_p5 = scmp.eq.s32.totalorder %s1403_s10, 0 }
  0x31   : > { %s1816_s17 = smov (%p38_p1, %s37_s17), 0  ;;  %p1045_p9 = scmp.lt.s32.totalorder %s1403_s10, 4 }
  0x32   : > { %1799 = sst [smem:[#allocation21_spill]] %s1816_s17  ;;  %p58_p8 = por %p57_p5, %p56_p4 }
  0x33   : > { %s45_s20 = ssub.s32 %s1399_s9, %s1816_s17  ;;  %s1545_s21 = sand.u32 1, %s1391_s29  }
  0x34   : > { %p47_p10 = scmp.eq.s32.totalorder %s45_s20, 0  ;;  %s906_s16 = sshll.u32 %s1545_s21, 3 }
  0x35   : > { %s956_s22 = sshll.u32 %s1399_s9, 7  ;;  %s1800_s0 = sld [smem:[#allocation22_spill]] }
  0x36   : > { %s1550_s23 = scalar_select %p47_p10, %s1391_s29, %s49_s19  }
  0x37   : > { %s302_s14 = scalar_lea.vmem [#allocation3], %s906_s16  ;;  %p1557_p7 = pnand %p1045_p9, %p58_p8 }
  0x38   : > { %s312_s18 = sshll.u32 %s302_s14, 4  ;;  %s299_s20 = scalar_lea.sflag [#allocation4], %s1545_s21  ;;  %s1561_s18 = int_to_ptr.vmem [resolvable:$true] %s312_s18 }
  0x39   : > { %p1171_p12 = pneg %p1557_p7 }
  0x3b   : > { %s1555_s25 = scalar_lea.hbm %s1800_s0, %s956_s22  ;;  %s1174_s15 = scalar_lea.hbm %s1800_s0, 512 }
  0x3c   : > { %s1169_s27 = scalar_lea.hbm %s1555_s25, 128  ;;  %p1175_p2 = scmp.lt.u32.totalorder %s1555_s25, %s1800_s0 }
  0x3d   : > { %p1170_p11 = scmp.ne.s32.totalorder %s1555_s25, %s1169_s27  ;;  %p1176_p3 = scmp.lt.u32.totalorder %s1174_s15, %s1169_s27 }
  0x3e   : > { %p1178_p1 = scmp.lt.u32.totalorder %s1169_s27, %s1555_s25 }
  0x3f   : > { %p1172_p13 = pnand %p1171_p12, %p1170_p11  ;;  %p1177_p6 = por %p1176_p3, %p1175_p2 }
  0x41   : > { %p1173_p0 = pneg %p1172_p13  ;;  %p1179_p4 = por %p1178_p1, %p1177_p6 }
  0x43   : > { %p1180_p5 = pnand %p1179_p4, %p1173_p0 }
  0x45   : > { %1183 = shalt.err (!%p1180_p5)
}
  0x46   : > { %s1184_s19 = scalar_lea.vmem %s1561_s18, 128  ;;  %s1408_s16 = smov [#allocation3]  }
  0x47   : > { %p1185_p8 = scmp.ne.s32.totalorder %s1561_s18, %s1184_s19  ;;  %s1189_s22 = sshll.u32 %s1408_s16, 4  ;;  %s1190_s22 = int_to_ptr.vmem [resolvable:$false] %s1189_s22 }
  0x48   : > { %s1191_s24 = scalar_lea.vmem %s1190_s22, 256  ;;  %p1192_p11 = scmp.lt.s32.totalorder %s1561_s18, %s1190_s22 }
  0x49   : > { %p1187_p9 = pnand %p1185_p8, %p1171_p12  ;;  %p1193_p13 = scmp.lt.s32.totalorder %s1191_s24, %s1184_s19 }
  0x4b   : > { %p1188_p10 = pneg %p1187_p9  ;;  %p1194_p2 = por %p1193_p13, %p1192_p11 }
  0x4d   : > { %p1195_p3 = pnand %p1194_p2, %p1188_p10 }
  0x4f   : > { %1198 = shalt.err (!%p1195_p3)
}
  0x50   : > { %1040 = dma.hbm_to_vmem [thread:$0]  (!%p1557_p7), %s1555_s25, 128, %s1561_s18, %s299_s20  }
  0x51   : > { %s957_s27 = sshll.u32 %s1399_s9, 11  ;;  %s1802_s15 = sshll.u32 %s1545_s21, 7 }
  0x52   : > { %s323_s14 = scalar_lea.vmem [#allocation6], %s1802_s15  ;;  %s319_s22 = sand.u32 1, %s1403_s10  }
  0x53   : > { %s330_s16 = sshll.u32 %s323_s14, 4  ;;  %s1599_s0 = scalar_lea.hbm %s1779_s1, %s957_s27  ;;  %s1593_s16 = int_to_ptr.vmem [resolvable:$true] %s330_s16 }
  0x54   : > { %s1601_s3 = scalar_lea.sflag [#allocation7], %s319_s22  ;;  %s1199_s17 = scalar_lea.hbm %s1599_s0, 2048 }
  0x55   : > { %p1200_p0 = scmp.ne.s32.totalorder %s1599_s0, %s1199_s17  ;;  %s1204_s18 = scalar_lea.hbm %s1779_s1, 8192 }
  0x56   : > { %p1205_p4 = scmp.lt.u32.totalorder %s1599_s0, %s1779_s1  ;;  %p1206_p5 = scmp.lt.u32.totalorder %s1204_s18, %s1199_s17 }
  0x57   : > { %p1202_p6 = pnand %p1200_p0, %p1171_p12  ;;  %p1208_p9 = scmp.lt.u32.totalorder %s1199_s17, %s1599_s0 }
  0x58   : > { %p1207_p8 = por %p1206_p5, %p1205_p4 }
  0x59   : > { %p1203_p1 = pneg %p1202_p6 }
  0x5a   : > { %p1209_p10 = por %p1208_p9, %p1207_p8 }
  0x5c   : > { %p1210_p11 = pnand %p1209_p10, %p1203_p1 }
  0x5e   : > { %1213 = shalt.err (!%p1210_p11)
}
  0x5f   : > { %s1214_s27 = scalar_lea.vmem %s1593_s16, 2048  ;;  %s1409_s14 = smov [#allocation6]  }
  0x60   : > { %p1215_p13 = scmp.ne.s32.totalorder %s1593_s16, %s1214_s27  ;;  %s1219_s22 = sshll.u32 %s1409_s14, 4  ;;  %s1220_s22 = int_to_ptr.vmem [resolvable:$false] %s1219_s22 }
  0x61   : > { %s1221_s19 = scalar_lea.vmem %s1220_s22, 4096  ;;  %p1222_p0 = scmp.lt.s32.totalorder %s1593_s16, %s1220_s22 }
  0x62   : > { %p1217_p2 = pnand %p1215_p13, %p1171_p12  ;;  %p1223_p6 = scmp.lt.s32.totalorder %s1221_s19, %s1214_s27 }
  0x64   : > { %p1218_p3 = pneg %p1217_p2  ;;  %p1224_p4 = por %p1223_p6, %p1222_p0 }
  0x66   : > { %p1225_p5 = pnand %p1224_p4, %p1218_p3 }
  0x68   : > { %1228 = shalt.err (!%p1225_p5)
}
  0x69   : > { %s1803_s17 = smov 4   ;;  %s1804_s24 = smov 64  }
  0x6a   : > { %1043 = dma.hbm_to_vmem [thread:$0]  (!%p1557_p7), %s1599_s0, 2048, %s1593_s16, %s1601_s3, %s1804_s24, %s1804_s24, %s1803_s17  }
  0x6b   : > { %p1805_p12 = scmp.ne.s32.totalorder %s1796_s13, 0 }
  0x6c   : > { %s344_s21 = sand.u32 (!%p1805_p12), 1, %s1387_s28   ;;  %p1806_p1 = scmp.ne.s32.totalorder (!%p1805_p12), %s1795_s12, 0 }
  0x6d   : > { %342 = sbr.rel (%p1805_p12) target bundleno = 734 (0x2de), region = 40  ;;  %s913_s25 = sshll.u32 (!%p1805_p12), %s344_s21, 3 }
  0x6e   : > { %s345_s18 = scalar_lea.sflag (!%p1805_p12), [#allocation4], %s344_s21  ;;  %s1633_s20 = scalar_lea.vmem (!%p1805_p12), [#allocation3], %s913_s25 }
  0x74   : > { %1358 = dma.done.wait (%p1806_p1), %s345_s18, 128  }
  0x75   : > { %1360 = vsyncadd (%p1806_p1), %s345_s18, 4294967168  ;;  %s353_s26 = sand.u32 1, %s1491_s11   ;;  %s914_s15 = sshll.u32 %s344_s21, 7 }
  0x76   : > { %s354_s0 = scalar_lea.sflag [#allocation7], %s353_s26  ;;  %s1640_s3 = scalar_lea.vmem [#allocation6], %s914_s15 }
  0x77   : > { %1362 = dma.done.wait (%p1806_p1), %s354_s0, 2048  }
  0x78   : > { %1364 = vsyncadd (%p1806_p1), %s354_s0, 4294965248  ;;  %p1807_p7 = scmp.eq.s32.totalorder %s1491_s11, 0 }
  0x7a   : > { %1366 = dma.done.wait (%p1807_p7), [#allocation7], 1024   ;;  %p1808_p8 = pmov %p1807_p7 }
  0x7b   : > { %p916_p9 = scmp.ne.s32.totalorder %s1395_s30, 0 }
  0x7c   : > { %1368 = vsyncadd (%p1808_p8), [#allocation7], 4294966272  ;;  %v1410_v0 = vmov (!%p916_p9), 0.0  }
  0x7d   : > { %400 = sbr.rel (%p916_p9) target bundleno = 132 (0x84), region = 56  ;;  %401 = vst [vmem:[#allocation2] sm:$0xff] (!%p916_p9), %v1410_v0 }
  0x84 PF: > { %v1113_v1 = vld [vmem:[%s1640_s3 + $0x40] sm:$0xff]   ;;  %v1115_v3 = vld [vmem:[%s1640_s3 + $0x48] sm:$0xff]   ;;  %v1117_v5 = vld [vmem:[%s1640_s3 + $0x50] sm:$0xff]   ;;  %p935_p10 = scmp.ne.s32.totalorder %s1395_s30, 3 }
  0x85   : > { %v1114_v2 = vld [vmem:[%s1640_s3] sm:$0xff]   ;;  %958 = vmatprep.subr.bf16.mxu0 %v1113_v1  ;;  %v1116_v4 = vld [vmem:[%s1640_s3 + $0x8] sm:$0xff]   ;;  %v1118_v6 = vld [vmem:[%s1640_s3 + $0x10] sm:$0xff]   ;;  %v1411_v28 = vmov (!%p935_p10), 0.0   ;;  %vm1412_vm0 = vmmov (!%p935_p10), 0  }
  0x86   : > { %959 = vmatpush3.bf16.msra.mxu0 %v1114_v2  ;;  %v1119_v7 = vld [vmem:[%s1640_s3 + $0x58] sm:$0xff]   ;;  %v1121_v9 = vld [vmem:[%s1640_s3 + $0x60] sm:$0xff]   ;;  %v1123_v11 = vld [vmem:[%s1640_s3 + $0x68] sm:$0xff]  }
  0x87   : > { %960 = vmatprep.subr.bf16.mxu0 %v1115_v3  ;;  %v1120_v8 = vld [vmem:[%s1640_s3 + $0x18] sm:$0xff]   ;;  %v1122_v10 = vld [vmem:[%s1640_s3 + $0x20] sm:$0xff]   ;;  %v1124_v14 = vld [vmem:[%s1640_s3 + $0x28] sm:$0xff]  }
  0x88   : > { %v403_v12 = vld [vmem:[%s1633_s20] sm:$0xff]  ;;  %v402_v21 = vld [vmem:[#allocation2] sm:$0xff]  ;;  %v1131_v27 = vld [vmem:[#allocation8] sm:$0xff] (!%p935_p10)  }
  0x89   : > { %v918_v13 = vcombine.high %v403_v12, %v403_v12  ;;  %v1125_v15 = vld [vmem:[%s1640_s3 + $0x70] sm:$0xff]   ;;  %v1127_v17 = vld [vmem:[%s1640_s3 + $0x78] sm:$0xff]   ;;  %v917_v19 = vcombine.low %v403_v12, %v403_v12  ;;  %v1132_v29 = vld [vmem:[#allocation8 + $0x8] sm:$0xff] (!%p935_p10)  }
  0x8a   : > { %961 = vmatpush3.bf16.msra.mxu0 %v1116_v4  ;;  %v1126_v16 = vld [vmem:[%s1640_s3 + $0x30] sm:$0xff]   ;;  %v1128_v18 = vld [vmem:[%s1640_s3 + $0x38] sm:$0xff]   ;;  %v936_v32 = vld [vmem:[%s1780_s2] ss:$0 sm:$0xff] (!%p935_p10) }
  0x8b   : > { %962 = vmatprep.subr.bf16.mxu0 %v1117_v5  ;;  %571 = vmatprep.mubr.bf16.mxu0 %v918_v13  ;;  %v1133_v30 = vld [vmem:[#allocation8 + $0x10] sm:$0xff] (!%p935_p10)   ;;  %v1134_v34 = vld [vmem:[#allocation8 + $0x18] sm:$0xff] (!%p935_p10)   ;;  %v1135_v36 = vld [vmem:[#allocation8 + $0x20] sm:$0xff] (!%p935_p10)  }
  0x8c   : > { %v1136_v37 = vld [vmem:[#allocation8 + $0x28] sm:$0xff] (!%p935_p10)   ;;  %v1137_v38 = vld [vmem:[#allocation8 + $0x30] sm:$0xff] (!%p935_p10)   ;;  %v1138_v39 = vld [vmem:[#allocation8 + $0x38] sm:$0xff] (!%p935_p10)  }
  0x8d   : > { %v937_v40 = vld [vmem:[%s1782_s4] ss:$0 sm:$0xff] (!%p935_p10) }
  0x8e   : > { %963 = vmatpush3.bf16.msra.mxu0 %v1118_v6 }
  0x8f   : > { %964 = vmatprep.subr.bf16.mxu0 %v1119_v7 }
  0x92   : > { %965 = vmatpush3.bf16.msra.mxu0 %v1120_v8 }
  0x93   : > { %966 = vmatprep.subr.bf16.mxu0 %v1121_v9 }
  0x96   : > { %967 = vmatpush3.bf16.msra.mxu0 %v1122_v10 }
  0x97   : > { %968 = vmatprep.subr.bf16.mxu0 %v1123_v11 }
  0x9a   : > { %969 = vmatpush3.bf16.msra.mxu0 %v1124_v14 }
  0x9b   : > { %970 = vmatprep.subr.bf16.mxu0 %v1125_v15 }
  0x9e   : > { %971 = vmatpush3.bf16.msra.mxu0 %v1126_v16 }
  0x9f   : > { %972 = vmatprep.subr.bf16.mxu0 %v1127_v17 }
  0xa2   : > { %973 = vmatpush3.bf16.msra.mxu0 %v1128_v18 }
  0xa3   : > { %989 = vmatprep.subr.bf16.mxu0 (!%p935_p10), %v1411_v28 }
  0xa5   : > { %572 = vmatmul.mubr.bf16.vlgmr.msra.gmra.mrb[0].mxu0 %v917_v19 }
  0xa6   : > { %990 = vmatpush3.bf16.msra.mxu0 (!%p935_p10), %v1131_v27  ;;  %1005 = vmatprep.mubr.msk.bf16.mxu0 (!%p935_p10), %vm1412_vm0, %v1411_v28 }
  0xa7   : > { %991 = vmatprep.subr.bf16.mxu0 (!%p935_p10), %v1411_v28 }
  0xaa   : > { %992 = vmatpush3.bf16.msra.mxu0 (!%p935_p10), %v1132_v29 }
  0xab   : > { %993 = vmatprep.subr.bf16.mxu0 (!%p935_p10), %v1411_v28 }
  0xae   : > { %994 = vmatpush3.bf16.msra.mxu0 (!%p935_p10), %v1133_v30 }
  0xaf   : > { %995 = vmatprep.subr.bf16.mxu0 (!%p935_p10), %v1411_v28 }
  0xb2   : > { %996 = vmatpush3.bf16.msra.mxu0 (!%p935_p10), %v1134_v34 }
  0xb3   : > { %997 = vmatprep.subr.bf16.mxu0 (!%p935_p10), %v1411_v28 }
  0xb6   : > { %998 = vmatpush3.bf16.msra.mxu0 (!%p935_p10), %v1135_v36 }
  0xb7   : > { %999 = vmatprep.subr.bf16.mxu0 (!%p935_p10), %v1411_v28 }
  0xba   : > { %1000 = vmatpush3.bf16.msra.mxu0 (!%p935_p10), %v1136_v37 }
  0xbb   : > { %1001 = vmatprep.subr.bf16.mxu0 (!%p935_p10), %v1411_v28 }
  0xbe   : > { %1002 = vmatpush3.bf16.msra.mxu0 (!%p935_p10), %v1137_v38 }
  0xbf   : > { %1003 = vmatprep.subr.bf16.mxu0 (!%p935_p10), %v1411_v28 }
  0xc2   : > { %1004 = vmatpush3.bf16.msra.mxu0 (!%p935_p10), %v1138_v39 }
 0x178   : > { %v974_v20 = vpop.f32.mrb[0].mxu0  ;;  %584 = sbr.rel (%p935_p10) target bundleno = 638 (0x27e), region = 60 }
 0x179   : > { %v975_v22 = vpop.f32.mrb[1].mxu0 }
 0x17a   : > { %v976_v23 = vadd.f32 %v975_v22, %v974_v20  ;;  %v977_v24 = vpop.f32.mrb[2].mxu0 }
 0x17b   : > { %v978_v25 = vpop.f32.mrb[3].mxu0 }
 0x17c   : > { %v579_v26 = vadd.f32 %v976_v23, %v402_v21 }
 0x17e   : > { %580 = vst [vmem:[#allocation2] sm:$0xff] %v579_v26 }
 0x185   : > { %v585_v31 = vld [vmem:[#allocation2] sm:$0xff] }
 0x186   : > { %v593_v33 = vadd.f32 %v936_v32, %v585_v31 }
 0x188   : > { %v594_v35 = vpack.c.bf16 %v593_v33, %v593_v33  ;;  %715 = vst [vmem:[#allocation9] sm:$0xff] %v593_v33 }
 0x18a   : > { %717 = vst [vmem:[#allocation12] sm:$0xf] %v594_v35  ;;  %1006 = vmatmul.mubr.bf16.vlgmr.msra.gmra.mrb[0].mxu0 %v594_v35 }
 0x25d   : > { %v700_v41 = vpop.f32.mrb[0].mxu0 }
 0x25e   : > { %v701_v42 = vadd.f32 %v937_v40, %v700_v41  ;;  %v1007_v43 = vpop.f32.mrb[1].mxu0 }
 0x25f   : > { %v703_v44 = vpop.f32.mrb[2].mxu0 }
 0x260   : > { %v706_v45 = vmul.f32 %v701_v42, %v701_v42  ;;  %v1008_v46 = vpop.f32.mrb[3].mxu0 }
 0x262   : > { %v707_v47 = vmul.f32 %v706_v45, %v701_v42 }
 0x264   : > { %v708_v48 = vmul.f32 0.044715, %v707_v47 }
 0x266   : > { %v709_v49 = vadd.f32 %v708_v48, %v701_v42 }
 0x268   : > { %v710_v50 = vmul.f32 0.7978846, %v709_v49 }
 0x26a   : > { %1139 = vtanh.f32 %v710_v50 }
 0x274   : > { %v1140_v51 = vpop.eup %1139 }
 0x275   : > { %v712_v52 = vadd.f32 1.0, %v1140_v51 }
 0x277   : > { %v713_v53 = vmul.f32 0.5, %v712_v52 }
 0x279   : > { %v714_v54 = vmul.f32 %v713_v53, %v701_v42 }
 0x27b   : > { %716 = vst [vmem:[#allocation10] sm:$0xff] %v714_v54  ;;  %v718_v55 = vpack.c.bf16 %v714_v54, %v714_v54 }
 0x27d   : > { %719 = vst [vmem:[#allocation13] sm:$0xf] %v718_v55 }
 0x27e PF: > { %p1047_p11 = scmp.eq.s32.totalorder %s1491_s11, 3  ;;  %s1413_s27 = smov [#allocation10]  }
 0x27f   : > { %s742_s14 = sshll.u32 %s1413_s27, 4  ;;  %s743_s14 = int_to_ptr.vmem [resolvable:$true] %s742_s14 }
 0x280   : > { %s1229_s22 = scalar_lea.vmem %s743_s14, 128  ;;  %p1236_p0 = scmp.lt.s32.totalorder %s743_s14, %s743_s14 }
 0x281   : > { %p1230_p13 = scmp.ne.s32.totalorder %s743_s14, %s1229_s22  ;;  %p1237_p6 = scmp.lt.s32.totalorder %s1229_s22, %s1229_s22 }
 0x283   : > { %p1231_p2 = pnand %p1230_p13, %p1047_p11  ;;  %p1238_p4 = por %p1237_p6, %p1236_p0 }
 0x285   : > { %p1232_p3 = pneg %p1231_p2 }
 0x287   : > { %p1239_p5 = pnand %p1238_p4, %p1232_p3 }
 0x289   : > { %1242 = shalt.err (!%p1239_p5)
}
 0x28a   : > { %s1243_s24 = scalar_lea.hbm %s1784_s6, 128 }
 0x28b   : > { %p1244_p12 = scmp.ne.s32.totalorder %s1784_s6, %s1243_s24  ;;  %p1249_p8 = scmp.lt.u32.totalorder %s1243_s24, %s1784_s6 }
 0x28d   : > { %p1245_p1 = pnand %p1244_p12, %p1047_p11 }
 0x28f   : > { %p1246_p7 = pneg %p1245_p1 }
 0x291   : > { %p1251_p9 = pnand %p1249_p8, %p1246_p7 }
 0x293   : > { %1254 = shalt.err (!%p1251_p9)
}
 0x294   : > { %1020 = dma.vmem_to_hbm [thread:$0]  (%p1047_p11), %s743_s14, 128, %s1784_s6, [#allocation11]  }
 0x295   : > { %s1414_s0 = smov [#allocation9]   ;;  %s1415_s12 = smov [#allocation12]  }
 0x296   : > { %s729_s3 = sshll.u32 %s1414_s0, 4  ;;  %s755_s13 = sshll.u32 %s1415_s12, 4  ;;  %s730_s3 = int_to_ptr.vmem [resolvable:$true] %s729_s3  ;;  %s756_s13 = int_to_ptr.vmem [resolvable:$true] %s755_s13 }
 0x297   : > { %s1255_s30 = scalar_lea.vmem %s730_s3, 128  ;;  %p1262_p3 = scmp.lt.s32.totalorder %s730_s3, %s730_s3 }
 0x298   : > { %p1256_p10 = scmp.ne.s32.totalorder %s730_s3, %s1255_s30  ;;  %p1263_p0 = scmp.lt.s32.totalorder %s1255_s30, %s1255_s30 }
 0x29a   : > { %p1257_p13 = pnand %p1256_p10, %p1047_p11  ;;  %p1264_p6 = por %p1263_p0, %p1262_p3 }
 0x29c   : > { %p1258_p2 = pneg %p1257_p13 }
 0x29e   : > { %p1265_p4 = pnand %p1264_p6, %p1258_p2 }
 0x2a0   : > { %1268 = shalt.err (!%p1265_p4)
}
 0x2a1   : > { %s1269_s14 = scalar_lea.hbm %s1783_s5, 128 }
 0x2a2   : > { %p1270_p5 = scmp.ne.s32.totalorder %s1783_s5, %s1269_s14  ;;  %p1275_p7 = scmp.lt.u32.totalorder %s1269_s14, %s1783_s5 }
 0x2a4   : > { %p1271_p12 = pnand %p1270_p5, %p1047_p11 }
 0x2a6   : > { %p1272_p1 = pneg %p1271_p12 }
 0x2a8   : > { %p1277_p8 = pnand %p1275_p7, %p1272_p1 }
 0x2aa   : > { %1280 = shalt.err (!%p1277_p8)
}
 0x2ab   : > { %1018 = dma.vmem_to_hbm [thread:$0]  (%p1047_p11), %s730_s3, 128, %s1783_s5, [#allocation5]  }
 0x2ac   : > { %s1281_s18 = scalar_lea.vmem %s756_s13, 64  ;;  %p1288_p2 = scmp.lt.s32.totalorder %s756_s13, %s756_s13 }
 0x2ad   : > { %p1282_p9 = scmp.ne.s32.totalorder %s756_s13, %s1281_s18  ;;  %p1289_p3 = scmp.lt.s32.totalorder %s1281_s18, %s1281_s18 }
 0x2af   : > { %p1283_p10 = pnand %p1282_p9, %p1047_p11  ;;  %p1290_p0 = por %p1289_p3, %p1288_p2 }
 0x2b1   : > { %p1284_p13 = pneg %p1283_p10 }
 0x2b3   : > { %p1291_p6 = pnand %p1290_p0, %p1284_p13 }
 0x2b5   : > { %1294 = shalt.err (!%p1291_p6)
}
 0x2b6   : > { %s1295_s15 = scalar_lea.hbm %s1785_s7, 64 }
 0x2b7   : > { %p1296_p4 = scmp.ne.s32.totalorder %s1785_s7, %s1295_s15  ;;  %p1301_p1 = scmp.lt.u32.totalorder %s1295_s15, %s1785_s7 }
 0x2b9   : > { %p1297_p5 = pnand %p1296_p4, %p1047_p11 }
 0x2bb   : > { %p1298_p12 = pneg %p1297_p5 }
 0x2bd   : > { %p1303_p7 = pnand %p1301_p1, %p1298_p12 }
 0x2bf   : > { %1306 = shalt.err (!%p1303_p7)
}
 0x2c0   : > { %1022 = dma.vmem_to_hbm [thread:$0]  (%p1047_p11), %s756_s13, 64, %s1785_s7, [#allocation11]  }
 0x2c1   : > { %s1416_s14 = smov [#allocation13]  }
 0x2c2   : > { %s768_s22 = sshll.u32 %s1416_s14, 4  ;;  %s769_s22 = int_to_ptr.vmem [resolvable:$true] %s768_s22 }
 0x2c3   : > { %s1307_s19 = scalar_lea.vmem %s769_s22, 64  ;;  %p1314_p13 = scmp.lt.s32.totalorder %s769_s22, %s769_s22 }
 0x2c4   : > { %p1308_p8 = scmp.ne.s32.totalorder %s769_s22, %s1307_s19  ;;  %p1315_p2 = scmp.lt.s32.totalorder %s1307_s19, %s1307_s19 }
 0x2c6   : > { %p1309_p9 = pnand %p1308_p8, %p1047_p11  ;;  %p1316_p3 = por %p1315_p2, %p1314_p13 }
 0x2c8   : > { %p1310_p10 = pneg %p1309_p9 }
 0x2ca   : > { %p1317_p0 = pnand %p1316_p3, %p1310_p10 }
 0x2cc   : > { %1320 = shalt.err (!%p1317_p0)
}
 0x2cd   : > { %s1321_s21 = scalar_lea.hbm %s1786_s8, 64 }
 0x2ce   : > { %p1322_p6 = scmp.ne.s32.totalorder %s1786_s8, %s1321_s21  ;;  %p1327_p12 = scmp.lt.u32.totalorder %s1321_s21, %s1786_s8 }
 0x2d0   : > { %p1323_p4 = pnand %p1322_p6, %p1047_p11 }
 0x2d2   : > { %p1324_p5 = pneg %p1323_p4 }
 0x2d4   : > { %p1329_p1 = pnand %p1327_p12, %p1324_p5 }
 0x2d6   : > { %1332 = shalt.err (!%p1329_p1)
}
 0x2d7   : > { %1024 = dma.vmem_to_hbm [thread:$0]  (%p1047_p11), %s769_s22, 64, %s1786_s8, [#allocation14]  }
 0x2d8   : > { %1370 = dma.done.wait (%p1047_p11), [#allocation5], 128  }
 0x2d9   : > { %1372 = vsyncadd (%p1047_p11), [#allocation5], 4294967168 }
 0x2da   : > { %1374 = dma.done.wait (%p1047_p11), [#allocation11], 192  }
 0x2db   : > { %1376 = vsyncadd (%p1047_p11), [#allocation11], 4294967104 }
 0x2dc   : > { %1378 = dma.done.wait (%p1047_p11), [#allocation14], 64  }
 0x2dd   : > { %1380 = vsyncadd (%p1047_p11), [#allocation14], 4294967232 }
 0x2de PF: > { %s28_s10 = sadd.s32 1, %s1403_s10   ;;  %s1809_s0 = sld [smem:[#allocation21_spill]] }
 0x2df   : > { %p25_p7 = scmp.ge.s32.totalorder %s28_s10, 6   ;;  %s1810_s27 = smov %s1387_s28 }
 0x2e0   : > { %s1811_s28 = smov %s1391_s29  ;;  %s1812_s29 = smov %s1550_s23 }
 0x2e1   : > { %s1813_s30 = smov %s1399_s9  ;;  %27 = sbr.rel (!%p25_p7) target bundleno = 12 (0xc), region = 130 }
 0x2e4   : > { %s1814_s9 = smov %s1809_s0 }
 0x2e8   :  { %793 = vsyncpa [#allocation4], 1 }
 0x2e9   :  { %795 = vsyncpa [#allocation4 + $0x1], 1 }
 0x2ea   :  { %796 = vsyncpa [#allocation7], 1 }
 0x2eb   :  { %798 = vsyncpa [#allocation7 + $0x1], 1 }
 0x2ec   :  { %799 = vsyncpa [#allocation5], 1 }
 0x2ed   :  { %801 = vsyncpa [#allocation5 + $0x1], 1 }
 0x2ee   :  { %802 = vsyncpa [#allocation11], 1 }
 0x2ef   :  { %803 = vsyncpa [#allocation14], 1 }

</bundles_post_ra>
